<compile_context>
chip_gen: v5e
topology: v5e:2x2
jax: 0.10.0
libtpu: 0.0.40
codegen_flags: <defaults>
</compile_context>

<pallas_src>
import functools

import jax
import jax.numpy as jnp
from jax.experimental import pallas as pl
from jax.experimental.pallas import tpu as pltpu


def _round_up(x, m):
    return (x + m - 1) // m * m


# ---- Pass A: fused  y = relu(A @ (X W_gc) + b_gc) + relu(X W_res^T + b_res)  + BN partials --
def _agg_kernel(adj_ref, xk_ref, xi_ref, wgc_ref, wres_ref, bgc_ref, bres_ref,
                y_ref, stats_ref, *, tm, n_true):
    # program_id / num_programs only at kernel top level (interpret/lowering-safe).
    i = pl.program_id(0)
    k = pl.program_id(1)
    nk = pl.num_programs(1)
    row_base = i * tm

    @pl.when(k == 0)
    def _():
        y_ref[...] = jnp.zeros_like(y_ref)          # y block is resident over k: f32 accumulator

    # Recompute the GraphConv transform for this reduction tile (no XW HBM round trip).
    xw_k = jnp.dot(xk_ref[...], wgc_ref[...],
                   preferred_element_type=jnp.float32).astype(jnp.bfloat16)   # (Tk, FP) bf16
    a = adj_ref[...].astype(jnp.bfloat16)            # int8 0/1 -> bf16 (exact), MXU fast path
    y_ref[...] += jnp.dot(a, xw_k, preferred_element_type=jnp.float32)

    @pl.when(k == nk - 1)
    def _():
        # Residual branch, once per row tile.
        res = jnp.maximum(
            jnp.dot(xi_ref[...], wres_ref[...], preferred_element_type=jnp.float32)
            + bres_ref[...], 0.0)
        h = jnp.maximum(y_ref[...] + bgc_ref[...], 0.0)       # GraphConv bias + relu
        rows = row_base + jax.lax.broadcasted_iota(jnp.int32, (tm, 1), 0)
        y = jnp.where(rows < n_true, h + res, 0.0)            # zero N-padding rows
        y_ref[...] = y
        # Masked per-row-tile BatchNorm partial statistics.
        s = jnp.sum(y, axis=0, keepdims=True)                 # (1, FP)
        sq = jnp.sum(y * y, axis=0, keepdims=True)            # (1, FP)
        stats_ref[0] = jnp.concatenate([s, sq], axis=0)       # (2, FP)


# ---- Pass B: BatchNorm apply (streaming normalize with precomputed scale/shift) -------------
def _bn_kernel(y_ref, scale_ref, shift_ref, out_ref):
    out_ref[...] = (y_ref[...] * scale_ref[...] + shift_ref[...]).astype(out_ref.dtype)


def gcn_layer(adj, feats, w_gc, b_gc, w_res, b_res, gamma, beta, *, tile=1024, eps=1e-5):
    """adj: (N, N) 0/1 with A[i, j] = 1 iff edge j -> i.  feats: (N, Fin).
       w_gc (Fin, Fout), b_gc (Fout,), w_res (Fout, Fin) [torch Linear layout],
       gamma/beta (Fout,).  Returns (N, Fout) f32."""
    N, Fin = feats.shape
    Fout = w_gc.shape[1]
    f32, bf16 = jnp.float32, jnp.bfloat16

    FP = _round_up(max(Fout, 128), 128)          # lane-dense padded output width
    T = min(tile, _round_up(N, 128))             # row == reduction tile (multiple of 128)
    Np = _round_up(N, T)                         # padded node count
    gr = Np // T                                 # number of row / reduction tiles

    # ---- parameter / feature layout glue (lane-padded, transform weights in bf16) ----
    wgc_p = jnp.zeros((Fin, FP), bf16).at[:, :Fout].set(w_gc.astype(bf16))
    wres_p = jnp.zeros((Fin, FP), bf16).at[:, :Fout].set(w_res.T.astype(bf16))
    bgc_p = jnp.zeros((1, FP), f32).at[0, :Fout].set(b_gc.astype(f32))
    bres_p = jnp.zeros((1, FP), f32).at[0, :Fout].set(b_res.astype(f32))
    x_p = jnp.zeros((Np, Fin), bf16).at[:N, :].set(feats.astype(bf16))

    # Adjacency at 1 byte/element; skip the padded duplicate if the caller already provides it.
    if adj.dtype == jnp.int8 and adj.shape == (Np, Np):
        adj_p = adj
    else:
        adj_p = jnp.zeros((Np, Np), jnp.int8).at[:N, :N].set(adj.astype(jnp.int8))

    cp_a = pltpu.CompilerParams(dimension_semantics=("parallel", "arbitrary"))
    cp_b = pltpu.CompilerParams(dimension_semantics=("parallel",))

    # ---- Pass A ----
    y, stats = pl.pallas_call(
        functools.partial(_agg_kernel, tm=T, n_true=N),
        out_shape=(jax.ShapeDtypeStruct((Np, FP), f32),
                   jax.ShapeDtypeStruct((gr, 2, FP), f32)),
        grid=(gr, gr),
        in_specs=[pl.BlockSpec((T, T), lambda i, k: (i, k)),      # A tile (int8)
                  pl.BlockSpec((T, Fin), lambda i, k: (k, 0)),    # X reduction tile
                  pl.BlockSpec((T, Fin), lambda i, k: (i, 0)),    # X row tile (residual)
                  pl.BlockSpec((Fin, FP), lambda i, k: (0, 0)),   # W_gc          (resident)
                  pl.BlockSpec((Fin, FP), lambda i, k: (0, 0)),   # W_res^T       (resident)
                  pl.BlockSpec((1, FP), lambda i, k: (0, 0)),     # b_gc
                  pl.BlockSpec((1, FP), lambda i, k: (0, 0))],    # b_res
        out_specs=(pl.BlockSpec((T, FP), lambda i, k: (i, 0)),        # y: resident over k
                   pl.BlockSpec((1, 2, FP), lambda i, k: (i, 0, 0))), # BN partials per row tile
        compiler_params=cp_a,
    )(adj_p, x_p, x_p, wgc_p, wres_p, bgc_p, bres_p)

    # ---- tiny global BN reduction (plain JAX): (gr, 2, FP) -> scale/shift (1, FP) ----
    total = jnp.sum(stats, axis=0)                       # (2, FP): [sum, sum_sq] over valid rows
    mean = total[0] / N
    var = jnp.maximum(total[1] / N - mean * mean, 0.0)   # biased variance (BN training mode)
    inv = jax.lax.rsqrt(var + eps)
    gamma_p = jnp.ones((FP,), f32).at[:Fout].set(gamma.astype(f32))
    beta_p = jnp.zeros((FP,), f32).at[:Fout].set(beta.astype(f32))
    scale = (gamma_p * inv).reshape(1, FP)
    shift = (beta_p - mean * gamma_p * inv).reshape(1, FP)

    # ---- Pass B ----
    out_p = pl.pallas_call(
        _bn_kernel,
        out_shape=jax.ShapeDtypeStruct((Np, FP), f32),
        grid=(gr,),
        in_specs=[pl.BlockSpec((T, FP), lambda i: (i, 0)),
                  pl.BlockSpec((1, FP), lambda i: (0, 0)),
                  pl.BlockSpec((1, FP), lambda i: (0, 0))],
        out_specs=pl.BlockSpec((T, FP), lambda i: (i, 0)),
        compiler_params=cp_b,
    )(y, scale, shift)

    return out_p[:N, :Fout]


if __name__ == "__main__":
    key = jax.random.PRNGKey(0)
    k_adj, k_x, k_wgc, k_bgc, k_wres, k_bres = jax.random.split(key, 6)

    N, IN_FEATS, OUT_FEATS = 300, 16, 32

    # Random directed 0/1 graph with self-loops (dst-row convention).
    adj = (jax.random.uniform(k_adj, (N, N)) < 0.15).astype(jnp.float32)
    adj = jnp.maximum(adj, jnp.eye(N, dtype=jnp.float32))
    feats = jax.random.normal(k_x, (N, IN_FEATS), dtype=jnp.float32)

    # Synthetic parameters (shapes match the PyTorch module's __init__).
    w_gc = jax.random.normal(k_wgc, (IN_FEATS, OUT_FEATS), dtype=jnp.float32) * 0.1
    b_gc = jax.random.normal(k_bgc, (OUT_FEATS,), dtype=jnp.float32) * 0.01
    w_res = jax.random.normal(k_wres, (OUT_FEATS, IN_FEATS), dtype=jnp.float32) * 0.1
    b_res = jax.random.normal(k_bres, (OUT_FEATS,), dtype=jnp.float32) * 0.01
    gamma = jnp.ones((OUT_FEATS,), dtype=jnp.float32)
    beta = jnp.zeros((OUT_FEATS,), dtype=jnp.float32)

    # tile=256 at N=300 exercises a real 2x2 grid (row + reduction tiling, BN row masking);
    # default tile=1024 is the production setting for large graphs.
    out = gcn_layer(adj, feats, w_gc, b_gc, w_res, b_res, gamma, beta, tile=256)
    jax.block_until_ready(out)
    assert out.shape == (N, OUT_FEATS)

    # bf16-faithful reference (same arithmetic the kernel performs, in plain JAX).
    x_bf = feats.astype(jnp.bfloat16).astype(jnp.float32)
    wgc_bf = w_gc.astype(jnp.bfloat16).astype(jnp.float32)
    wres_bf = w_res.astype(jnp.bfloat16).astype(jnp.float32)
    xw_bf = (x_bf @ wgc_bf).astype(jnp.bfloat16).astype(jnp.float32)
    h_ref = jnp.maximum(adj @ xw_bf + b_gc, 0.0)
    r_ref = jnp.maximum(x_bf @ wres_bf.T + b_res, 0.0)
    y_ref = h_ref + r_ref
    m = y_ref.mean(axis=0, keepdims=True)
    v = ((y_ref - m) ** 2).mean(axis=0, keepdims=True)
    ref_bf = (y_ref - m) / jnp.sqrt(v + 1e-5) * gamma + beta
    assert jnp.allclose(out, ref_bf, atol=5e-3, rtol=5e-3), "mismatch vs bf16-faithful reference"

    # Full-f32 module reference (loose: bf16 quantization of X/W is the only deliberate delta).
    h32 = jnp.maximum(adj @ (feats @ w_gc) + b_gc, 0.0)
    r32 = jnp.maximum(feats @ w_res.T + b_res, 0.0)
    y32 = h32 + r32
    m32 = y32.mean(axis=0, keepdims=True)
    v32 = ((y32 - m32) ** 2).mean(axis=0, keepdims=True)
    ref32 = (y32 - m32) / jnp.sqrt(v32 + 1e-5) * gamma + beta
    assert jnp.allclose(out, ref32, atol=2.5e-1), "far from f32 module reference"

    print("KERNEL_OK")
</pallas_src>

<mosaic_0001>
module attributes {stable_mosaic.version = 11 : i64} {
  func.func @_agg_kernel(%arg0: i32, %arg1: i32, %arg2: memref<256x256xi8, #tpu.memory_space<vmem>>, %arg3: memref<256x16xbf16, #tpu.memory_space<vmem>>, %arg4: memref<256x16xbf16, #tpu.memory_space<vmem>>, %arg5: memref<16x128xbf16, #tpu.memory_space<vmem>>, %arg6: memref<16x128xbf16, #tpu.memory_space<vmem>>, %arg7: memref<1x128xf32, #tpu.memory_space<vmem>>, %arg8: memref<1x128xf32, #tpu.memory_space<vmem>>, %arg9: memref<256x128xf32, #tpu.memory_space<vmem>>, %arg10: memref<1x2x128xf32, #tpu.memory_space<vmem>>) attributes {dimension_semantics = [#tpu.dimension_semantics<parallel>, #tpu.dimension_semantics<arbitrary>], iteration_bounds = array<i64: 2, 2>, scalar_prefetch = 0 : i64, scratch_operands = 0 : i64, tpu.core_type = #tpu.core_type<tc>, window_params = [{transform_indices = @transform_0, window_bounds = array<i64: 256, 256>}, {transform_indices = @transform_1, window_bounds = array<i64: 256, 16>}, {transform_indices = @transform_2, window_bounds = array<i64: 256, 16>}, {pipeline_mode = #tpu.pipeline_mode<synchronous>, transform_indices = @transform_3, window_bounds = array<i64: 16, 128>}, {pipeline_mode = #tpu.pipeline_mode<synchronous>, transform_indices = @transform_4, window_bounds = array<i64: 16, 128>}, {pipeline_mode = #tpu.pipeline_mode<synchronous>, transform_indices = @transform_5, window_bounds = array<i64: 1, 128>}, {pipeline_mode = #tpu.pipeline_mode<synchronous>, transform_indices = @transform_6, window_bounds = array<i64: 1, 128>}, {transform_indices = @transform_7, window_bounds = array<i64: 256, 128>}, {transform_indices = @transform_8, window_bounds = array<i64: 1, 2, 128>}]} {
    %c256_i32 = arith.constant 256 : i32
    %0 = arith.muli %arg0, %c256_i32 : i32
    %c0_i32 = arith.constant 0 : i32
    %1 = arith.cmpi eq, %arg1, %c0_i32 : i32
    %2 = arith.extui %1 : i1 to i32
    %c0_i32_0 = arith.constant 0 : i32
    %3 = arith.cmpi ne, %2, %c0_i32_0 : i32
    scf.if %3 {
      %cst_12 = arith.constant 0.000000e+00 : f32
      %17 = vector.broadcast %cst_12 : f32 to vector<256x128xf32>
      %c0_13 = arith.constant 0 : index
      %c0_14 = arith.constant 0 : index
      %18 = vector.load %arg9[%c0_13, %c0_14] : memref<256x128xf32, #tpu.memory_space<vmem>>, vector<256x128xf32>
      tpu.vector_store %arg9[%c0_13, %c0_14], %17 {strides = array<i32>} : memref<256x128xf32, #tpu.memory_space<vmem>>, vector<256x128xf32>,
    } else {
    }
    %c0 = arith.constant 0 : index
    %c0_1 = arith.constant 0 : index
    %4 = vector.load %arg3[%c0, %c0_1] : memref<256x16xbf16, #tpu.memory_space<vmem>>, vector<256x16xbf16>
    %c0_2 = arith.constant 0 : index
    %c0_3 = arith.constant 0 : index
    %5 = vector.load %arg5[%c0_2, %c0_3] : memref<16x128xbf16, #tpu.memory_space<vmem>>, vector<16x128xbf16>
    %cst = arith.constant dense<0.000000e+00> : vector<256x128xf32>
    %6 = tpu.matmul %4, %5, %cst {dimension_numbers = #tpu.dot_dimension_numbers<[1], [0], [0], [1], [0, 0, 1, 1], [], []>} : vector<256x16xbf16>, vector<16x128xbf16>, vector<256x128xf32> -> vector<256x128xf32>
    %7 = arith.truncf %6 : vector<256x128xf32> to vector<256x128xbf16>
    %c0_4 = arith.constant 0 : index
    %c0_5 = arith.constant 0 : index
    %8 = vector.load %arg2[%c0_4, %c0_5] : memref<256x256xi8, #tpu.memory_space<vmem>>, vector<256x256xi8>
    %9 = arith.sitofp %8 : vector<256x256xi8> to vector<256x256xbf16>
    %c0_6 = arith.constant 0 : index
    %c0_7 = arith.constant 0 : index
    %10 = vector.load %arg9[%c0_6, %c0_7] : memref<256x128xf32, #tpu.memory_space<vmem>>, vector<256x128xf32>
    %cst_8 = arith.constant dense<0.000000e+00> : vector<256x128xf32>
    %11 = tpu.matmul %9, %7, %cst_8 {dimension_numbers = #tpu.dot_dimension_numbers<[1], [0], [0], [1], [0, 0, 1, 1], [], []>} : vector<256x256xbf16>, vector<256x128xbf16>, vector<256x128xf32> -> vector<256x128xf32>
    %12 = arith.addf %10, %11 : vector<256x128xf32>
    %c0_9 = arith.constant 0 : index
    %c0_10 = arith.constant 0 : index
    %13 = vector.load %arg9[%c0_9, %c0_10] : memref<256x128xf32, #tpu.memory_space<vmem>>, vector<256x128xf32>
    tpu.vector_store %arg9[%c0_9, %c0_10], %12 {strides = array<i32>} : memref<256x128xf32, #tpu.memory_space<vmem>>, vector<256x128xf32>,
    %c1_i32 = arith.constant 1 : i32
    %14 = arith.cmpi eq, %arg1, %c1_i32 : i32
    %15 = arith.extui %14 : i1 to i32
    %c0_i32_11 = arith.constant 0 : i32
    %16 = arith.cmpi ne, %15, %c0_i32_11 : i32
    scf.if %16 {
      %c0_12 = arith.constant 0 : index
      %c0_13 = arith.constant 0 : index
      %17 = vector.load %arg4[%c0_12, %c0_13] : memref<256x16xbf16, #tpu.memory_space<vmem>>, vector<256x16xbf16>
      %c0_14 = arith.constant 0 : index
      %c0_15 = arith.constant 0 : index
      %18 = vector.load %arg6[%c0_14, %c0_15] : memref<16x128xbf16, #tpu.memory_space<vmem>>, vector<16x128xbf16>
      %cst_16 = arith.constant dense<0.000000e+00> : vector<256x128xf32>
      %19 = tpu.matmul %17, %18, %cst_16 {dimension_numbers = #tpu.dot_dimension_numbers<[1], [0], [0], [1], [0, 0, 1, 1], [], []>} : vector<256x16xbf16>, vector<16x128xbf16>, vector<256x128xf32> -> vector<256x128xf32>
      %c0_17 = arith.constant 0 : index
      %c0_18 = arith.constant 0 : index
      %20 = vector.load %arg8[%c0_17, %c0_18] : memref<1x128xf32, #tpu.memory_space<vmem>>, vector<1x128xf32>
      %21 = vector.broadcast %20 : vector<1x128xf32> to vector<256x128xf32>
      %22 = arith.addf %19, %21 : vector<256x128xf32>
      %cst_19 = arith.constant 0.000000e+00 : f32
      %23 = vector.broadcast %cst_19 : f32 to vector<256x128xf32>
      %24 = arith.maximumf %22, %23 : vector<256x128xf32>
      %c0_20 = arith.constant 0 : index
      %c0_21 = arith.constant 0 : index
      %25 = vector.load %arg9[%c0_20, %c0_21] : memref<256x128xf32, #tpu.memory_space<vmem>>, vector<256x128xf32>
      %c0_22 = arith.constant 0 : index
      %c0_23 = arith.constant 0 : index
      %26 = vector.load %arg7[%c0_22, %c0_23] : memref<1x128xf32, #tpu.memory_space<vmem>>, vector<1x128xf32>
      %27 = vector.broadcast %26 : vector<1x128xf32> to vector<256x128xf32>
      %28 = arith.addf %25, %27 : vector<256x128xf32>
      %cst_24 = arith.constant 0.000000e+00 : f32
      %29 = vector.broadcast %cst_24 : f32 to vector<256x128xf32>
      %30 = arith.maximumf %28, %29 : vector<256x128xf32>
      %31 = tpu.iota {dimensions = array<i32: 0>} : vector<256x1xi32>
      %32 = vector.broadcast %0 : i32 to vector<256x1xi32>
      %33 = arith.addi %32, %31 : vector<256x1xi32>
      %c300_i32 = arith.constant 300 : i32
      %34 = vector.broadcast %c300_i32 : i32 to vector<256x1xi32>
      %35 = arith.cmpi slt, %33, %34 : vector<256x1xi32>
      %36 = arith.addf %30, %24 : vector<256x128xf32>
      %cst_25 = arith.constant 0.000000e+00 : f32
      %37 = vector.shape_cast %35 : vector<256x1xi1> to vector<256x1xi1>
      %38 = vector.broadcast %37 : vector<256x1xi1> to vector<256x128xi1>
      %39 = vector.broadcast %cst_25 : f32 to vector<256x128xf32>
      %40 = arith.select %38, %36, %39 : vector<256x128xi1>, vector<256x128xf32>
      %c0_26 = arith.constant 0 : index
      %c0_27 = arith.constant 0 : index
      %41 = vector.load %arg9[%c0_26, %c0_27] : memref<256x128xf32, #tpu.memory_space<vmem>>, vector<256x128xf32>
      tpu.vector_store %arg9[%c0_26, %c0_27], %40 {strides = array<i32>} : memref<256x128xf32, #tpu.memory_space<vmem>>, vector<256x128xf32>,
      %cst_28 = arith.constant dense<0.000000e+00> : vector<128xf32>
      %42 = vector.multi_reduction <add>, %40, %cst_28 [0] : vector<256x128xf32> to vector<128xf32>
      %43 = vector.shape_cast %42 : vector<128xf32> to vector<1x128xf32>
      %44 = arith.mulf %40, %40 : vector<256x128xf32>
      %cst_29 = arith.constant dense<0.000000e+00> : vector<128xf32>
      %45 = vector.multi_reduction <add>, %44, %cst_29 [0] : vector<256x128xf32> to vector<128xf32>
      %46 = vector.shape_cast %45 : vector<128xf32> to vector<1x128xf32>
      %47 = tpu.concatenate %43, %46 in 0 : vector<1x128xf32>, vector<1x128xf32> -> vector<2x128xf32>
      %c0_30 = arith.constant 0 : index
      %c0_31 = arith.constant 0 : index
      %c0_32 = arith.constant 0 : index
      %48 = vector.load %arg10[%c0_30, %c0_31, %c0_32] : memref<1x2x128xf32, #tpu.memory_space<vmem>>, vector<1x2x128xf32>
      %49 = vector.shape_cast %48 : vector<1x2x128xf32> to vector<2x128xf32>
      %50 = vector.shape_cast %47 : vector<2x128xf32> to vector<1x2x128xf32>
      tpu.vector_store %arg10[%c0_30, %c0_31, %c0_32], %50 {strides = array<i32>} : memref<1x2x128xf32, #tpu.memory_space<vmem>>, vector<1x2x128xf32>,
    } else {
    }
    return
  }
  func.func @transform_0(%arg0: i32, %arg1: i32) -> (i32, i32) {
    %c0_i32 = arith.constant 0 : i32
    return %arg0, %arg1 : i32, i32
  }
  func.func @transform_1(%arg0: i32, %arg1: i32) -> (i32, i32) {
    %c0_i32 = arith.constant 0 : i32
    %c0_i32_0 = arith.constant 0 : i32
    return %arg1, %c0_i32 : i32, i32
  }
  func.func @transform_2(%arg0: i32, %arg1: i32) -> (i32, i32) {
    %c0_i32 = arith.constant 0 : i32
    %c0_i32_0 = arith.constant 0 : i32
    return %arg0, %c0_i32 : i32, i32
  }
  func.func @transform_3(%arg0: i32, %arg1: i32) -> (i32, i32) {
    %c0_i32 = arith.constant 0 : i32
    %c0_i32_0 = arith.constant 0 : i32
    %c0_i32_1 = arith.constant 0 : i32
    return %c0_i32, %c0_i32_0 : i32, i32
  }
  func.func @transform_4(%arg0: i32, %arg1: i32) -> (i32, i32) {
    %c0_i32 = arith.constant 0 : i32
    %c0_i32_0 = arith.constant 0 : i32
    %c0_i32_1 = arith.constant 0 : i32
    return %c0_i32, %c0_i32_0 : i32, i32
  }
  func.func @transform_5(%arg0: i32, %arg1: i32) -> (i32, i32) {
    %c0_i32 = arith.constant 0 : i32
    %c0_i32_0 = arith.constant 0 : i32
    %c0_i32_1 = arith.constant 0 : i32
    return %c0_i32, %c0_i32_0 : i32, i32
  }
  func.func @transform_6(%arg0: i32, %arg1: i32) -> (i32, i32) {
    %c0_i32 = arith.constant 0 : i32
    %c0_i32_0 = arith.constant 0 : i32
    %c0_i32_1 = arith.constant 0 : i32
    return %c0_i32, %c0_i32_0 : i32, i32
  }
  func.func @transform_7(%arg0: i32, %arg1: i32) -> (i32, i32) {
    %c0_i32 = arith.constant 0 : i32
    %c0_i32_0 = arith.constant 0 : i32
    return %arg0, %c0_i32 : i32, i32
  }
  func.func @transform_8(%arg0: i32, %arg1: i32) -> (i32, i32, i32) {
    %c0_i32 = arith.constant 0 : i32
    %c0_i32_0 = arith.constant 0 : i32
    %c0_i32_1 = arith.constant 0 : i32
    return %arg0, %c0_i32, %c0_i32_0 : i32, i32, i32
  }
}

</mosaic_0001>

<bundles_post_ra>
// kernel: tpu_custom_call.1
= control target key start
LH: loop header
LB: loop body
LE: loop exit
PB: predicated region body
PF: predicated region fallthrough
CT: control target
= control target key end

     0   :  { %s3547_s0 = inlined_call_operand.vmem [shape: s8[512,512], index: 0, kind: input, shape index: {}]   ;;  %s3548_s1 = inlined_call_operand.vmem [shape: bf16[512,16], index: 1, kind: input, shape index: {}]   ;;  %s3549_s2 = inlined_call_operand.vmem [shape: bf16[512,16], index: 2, kind: input, shape index: {}]   ;;  %s3550_s3 = inlined_call_operand.vmem [shape: bf16[16,128], index: 3, kind: input, shape index: {}]   ;;  %s3551_s4 = inlined_call_operand.vmem [shape: bf16[16,128], index: 4, kind: input, shape index: {}]   ;;  %s3552_s5 = inlined_call_operand.vmem [shape: f32[1,128], index: 5, kind: input, shape index: {}]   ;;  %s3553_s6 = inlined_call_operand.vmem [shape: f32[1,128], index: 6, kind: input, shape index: {}]   ;;  %s3554_s7 = inlined_call_operand.hbm [shape: f32[512,128], index: 7, kind: output, shape index: {0}]   ;;  %s3555_s8 = inlined_call_operand.hbm [shape: f32[2,2,128], index: 8, kind: output, shape index: {1}]  }
   0x1   :  { %3563 = sst [smem:[#allocation18_spill]] %s3547_s0 }
   0x2   :  { %14 = vsyncpa [#allocation4], 0 }
   0x3   :  { %16 = vsyncpa [#allocation4 + $0x1], 0 }
   0x4   :  { %17 = vsyncpa [#allocation6], 0 }
   0x5   :  { %19 = vsyncpa [#allocation6 + $0x1], 0  ;;  %s2669_s27 = smov 0   ;;  %s2671_s28 = smov 0  }
   0x6   :  { %s2673_s29 = smov 0   ;;  %s2675_s30 = smov 0  }
   0x7   :  { %s2677_s9 = smov 0   ;;  %s2679_s10 = smov 0  }
   0x8   :  { %s2681_s11 = smov 0   ;;  %s2683_s12 = smov 0  }
   0x9   :  { %s2685_s13 = smov 0   ;;  %s2687_s14 = smov 0  }
   0xa LB: > { %3564 = sst [smem:[#allocation9_spill]] %s2583_s27  ;;  %s2129_s15 = sadd.s32 4294967295, %s2619_s14   ;;  %s2619_s14 = sphi %s2687_s14, %s25_s14   ;;  %s2615_s13 = sphi %s2685_s13, %s3587_s13   ;;  %s2611_s12 = sphi %s2683_s12, %s3586_s12   ;;  %s2607_s11 = sphi %s2681_s11, %s3585_s11   ;;  %s2603_s10 = sphi %s2679_s10, %s3584_s10   ;;  %s2599_s9 = sphi %s2677_s9, %s3583_s9   ;;  %s2595_s30 = sphi %s2675_s30, %s3582_s30   ;;  %s2591_s29 = sphi %s2673_s29, %s3590_s29   ;;  %s2587_s28 = sphi %s2671_s28, %s3589_s28   ;;  %s2583_s27 = sphi %s2669_s27, %s3588_s27  }
   0xb   : > { %3565 = sst [smem:[#allocation10_spill]] %s2599_s9  ;;  %s2130_s16 = sadd.s32 4294967294, %s2619_s14  }
   0xc   : > { %3566 = sst [smem:[#allocation11_spill]] %s2611_s12  ;;  %s34_s17 = sadd.s32 1, %s2611_s12 }
   0xd   : > { %3567 = sst [smem:[#allocation12_spill]] %s2615_s13  ;;  %s37_s18 = sadd.s32 1, %s2615_s13 }
   0xe   : > { %p35_p0 = scmp.ge.s32.totalorder %s34_s17, 2  ;;  %s46_s19 = sadd.s32 1, %s2599_s9 }
   0xf   : > { %p53_p1 = scmp.ne.s32.totalorder %s2599_s9, %s2595_s30  ;;  %p54_p2 = scmp.eq.s32.totalorder %s2619_s14, 0 }
  0x10   : > { %s3592_s17 = smov (%p35_p0, %s34_s17), 0  ;;  %s3594_s18 = smov (!%p35_p0, %s37_s18), %s2615_s13 }
  0x11   : > { %3568 = sst [smem:[#allocation13_spill]] %s3592_s17  ;;  %s42_s20 = ssub.s32 %s2611_s12, %s3592_s17 }
  0x12   : > { %p2732_p3 = por %p54_p2, %p53_p1  ;;  %p39_p4 = scmp.ge.s32.totalorder %s3594_s18, 2 }
  0x13   : > { %s208_s22 = sadd.s32 1, %s2591_s29  ;;  %p218_p5 = scmp.ne.s32.totalorder %s2591_s29, %s2587_s28 }
  0x14   : > { %p219_p6 = scmp.eq.s32.totalorder %s2129_s15, 3  ;;  %s3596_s18 = smov (%p39_p4, %s3594_s18), 0 }
  0x15   : > { %3570 = sst [smem:[#allocation14_spill]] %s3596_s18  ;;  %p224_p8 = scmp.ne.s32.totalorder %s2587_s28, %s2583_s27 }
  0x16   : > { %p2741_p7 = por %p219_p6, %p218_p5  ;;  %s41_s24 = ssub.s32 %s2615_s13, %s3596_s18 }
  0x17   : > { %p225_p9 = scmp.eq.s32.totalorder %s2130_s16, 3  ;;  %s43_s25 = sor.u32 %s42_s20, %s41_s24 }
  0x18   : > { %p206_p10 = scmp.eq.s32.totalorder %s41_s24, 0  ;;  %p44_p11 = scmp.eq.s32.totalorder %s43_s25, 0 }
  0x19   : > { %p2749_p12 = por %p225_p9, %p224_p8  ;;  %p2132_p13 = scmp.ge.s32.totalorder %s2619_s14, 4 }
  0x1a   : > { %s2754_s17 = scalar_select %p206_p10, %s2591_s29, %s208_s22  }
  0x1b   : > { %s3572_s26 = scalar_select %p2749_p12, 1, 0 }
  0x1c   : > { %3574 = sst [smem:[#allocation16_spill]] %s2754_s17  ;;  %279 = sbr.rel (%p2132_p13) target bundleno = 59 (0x3b), region = 32 }
  0x1d   : > { %3573 = sst [smem:[#allocation15_spill]] %s3572_s26 }
  0x1e   : > { %s2757_s15 = scalar_select %p44_p11, %s2599_s9, %s46_s19  }
  0x20   : > { %3575 = sst [smem:[#allocation17_spill]] %s2757_s15 }
  0x21   : > { %282 = sbr.rel (!%p2732_p3) target bundleno = 59 (0x3b), region = 36  ;;  %s284_s16 = sand.u32 (%p2732_p3), 1, %s2599_s9  }
  0x22   : > { %s2135_s20 = sshll.u32 (%p2732_p3), %s2611_s12, 1  ;;  %s2133_s24 = sshll.u32 (%p2732_p3), %s284_s16, 7 }
  0x23   : > { %s2324_s25 = sshll.u32 (%p2732_p3), %s2615_s13, 5  ;;  %s3576_s0 = sld [smem:[#allocation18_spill]] (%p2732_p3) }
  0x24   : > { %s290_s18 = sadd.s32 (%p2732_p3), %s2324_s25, %s2135_s20  ;;  %s286_s21 = scalar_lea.vmem (%p2732_p3), [#allocation2], %s2133_s24 }
  0x25   : > { %s2137_s27 = sshll.u32 (%p2732_p3), %s290_s18, 3 }
  0x29   : > { %s2768_s19 = scalar_lea.vmem %s3576_s0, %s2137_s27 }
  0x2a   : > { %v305_v0 = vld [vmem:[%s2768_s19] sm:$0xff]  ;;  %v307_v1 = vld [vmem:[%s2768_s19 + $0x8] sm:$0xff] }
  0x2b   : > { %v309_v2 = vld [vmem:[%s2768_s19 + $0x20] sm:$0xff]  ;;  %306 = vst [vmem:[%s286_s21] sm:$0xff] %v305_v0  ;;  %v311_v3 = vld [vmem:[%s2768_s19 + $0x28] sm:$0xff] }
  0x2c   : > { %308 = vst [vmem:[%s286_s21 + $0x8] sm:$0xff] %v307_v1  ;;  %v313_v4 = vld [vmem:[%s2768_s19 + $0x40] sm:$0xff]  ;;  %v315_v5 = vld [vmem:[%s2768_s19 + $0x48] sm:$0xff] }
  0x2d   : > { %310 = vst [vmem:[%s286_s21 + $0x10] sm:$0xff] %v309_v2  ;;  %v317_v6 = vld [vmem:[%s2768_s19 + $0x60] sm:$0xff]  ;;  %v319_v7 = vld [vmem:[%s2768_s19 + $0x68] sm:$0xff] }
  0x2e   : > { %312 = vst [vmem:[%s286_s21 + $0x18] sm:$0xff] %v311_v3  ;;  %v321_v8 = vld [vmem:[%s2768_s19 + $0x80] sm:$0xff]  ;;  %v323_v9 = vld [vmem:[%s2768_s19 + $0x88] sm:$0xff] }
  0x2f   : > { %314 = vst [vmem:[%s286_s21 + $0x20] sm:$0xff] %v313_v4  ;;  %v325_v10 = vld [vmem:[%s2768_s19 + $0xa0] sm:$0xff]  ;;  %v327_v11 = vld [vmem:[%s2768_s19 + $0xa8] sm:$0xff] }
  0x30   : > { %316 = vst [vmem:[%s286_s21 + $0x28] sm:$0xff] %v315_v5  ;;  %v329_v12 = vld [vmem:[%s2768_s19 + $0xc0] sm:$0xff]  ;;  %v331_v13 = vld [vmem:[%s2768_s19 + $0xc8] sm:$0xff] }
  0x31   : > { %318 = vst [vmem:[%s286_s21 + $0x30] sm:$0xff] %v317_v6  ;;  %v333_v14 = vld [vmem:[%s2768_s19 + $0xe0] sm:$0xff]  ;;  %v335_v15 = vld [vmem:[%s2768_s19 + $0xe8] sm:$0xff] }
  0x32   : > { %320 = vst [vmem:[%s286_s21 + $0x38] sm:$0xff] %v319_v7 }
  0x33   : > { %322 = vst [vmem:[%s286_s21 + $0x40] sm:$0xff] %v321_v8 }
  0x34   : > { %324 = vst [vmem:[%s286_s21 + $0x48] sm:$0xff] %v323_v9 }
  0x35   : > { %326 = vst [vmem:[%s286_s21 + $0x50] sm:$0xff] %v325_v10 }
  0x36   : > { %328 = vst [vmem:[%s286_s21 + $0x58] sm:$0xff] %v327_v11 }
  0x37   : > { %330 = vst [vmem:[%s286_s21 + $0x60] sm:$0xff] %v329_v12 }
  0x38   : > { %332 = vst [vmem:[%s286_s21 + $0x68] sm:$0xff] %v331_v13 }
  0x39   : > { %334 = vst [vmem:[%s286_s21 + $0x70] sm:$0xff] %v333_v14 }
  0x3a   : > { %336 = vst [vmem:[%s286_s21 + $0x78] sm:$0xff] %v335_v15 }
  0x3b PF: > { %p2138_p0 = scmp.ge.s32.totalorder %s2619_s14, 1  ;;  %p359_p1 = scmp.lt.s32.totalorder %s2619_s14, 5 }
  0x3d   : > { %p360_p2 = pnand %p2138_p0, %p359_p1 }
  0x3e   : > { %s366_s27 = sand.u32 (!%p360_p2), 1, %s2595_s30   ;;  %s2790_s18 = sand.u32 (!%p360_p2), 1, %s2587_s28  }
  0x3f   : > { %363 = sbr.rel (%p360_p2) target bundleno = 1073 (0x431), region = 67  ;;  %s2139_s26 = sshll.u32 (!%p360_p2), %s366_s27, 7 }
  0x40   : > { %s2140_s16 = sshll.u32 (!%p360_p2), %s2790_s18, 8  ;;  %s2141_s20 = sshll.u32 (!%p360_p2), %s2790_s18, 1 }
  0x41   : > { %s2142_s24 = sshll.u32 (!%p360_p2), %s2603_s10, 5  ;;  %s2144_s25 = sshll.u32 (!%p360_p2), %s2607_s11, 5 }
  0x42   : > { %p417_p3 = scmp.lt.s32.totalorder (!%p360_p2), %s2142_s24, 63  ;;  %p423_p4 = scmp.lt.s32.totalorder (!%p360_p2), %s2144_s25, 63 }
  0x43   : > { %s2807_s9 = scalar_lea.vmem (!%p360_p2), [#allocation2], %s2139_s26  ;;  %s2809_s17 = scalar_lea.vmem (!%p360_p2), [#allocation3], %s2140_s16 }
  0x44   : > { %s3598_s24 = smov (!%p417_p3, %s2142_s24), 63  ;;  %s3600_s25 = smov (!%p423_p4, %s2144_s25), 63 }
  0x45   : > { %s2143_s19 = sshll.u32 %s3598_s24, 2  ;;  %s2145_s30 = sshll.u32 %s3600_s25, 2 }
  0x46   : > { %s2800_s13 = scalar_lea.vmem %s3548_s1, %s2143_s19  ;;  %s2805_s27 = scalar_lea.vmem %s3549_s2, %s2145_s30 }
  0x47   : > { %s2811_s22 = scalar_lea.vmem [#allocation5], %s2141_s20  ;;  %p2147_p5 = scmp.ne.s32.totalorder %s2603_s10, 0 }
  0x49   : > { %434 = sbr.rel (%p2147_p5) target bundleno = 111 (0x6f), region = 75 }
  0x4e   : > { %v2621_v16 = vmov 0.0  }
  0x4f   : > { %435 = vst [vmem:[%s2809_s17] sm:$0xff] %v2621_v16 }
  0x50   : > { %436 = vst [vmem:[%s2809_s17 + $0x8] sm:$0xff] %v2621_v16 }
  0x51   : > { %437 = vst [vmem:[%s2809_s17 + $0x10] sm:$0xff] %v2621_v16 }
  0x52   : > { %438 = vst [vmem:[%s2809_s17 + $0x18] sm:$0xff] %v2621_v16 }
  0x53   : > { %439 = vst [vmem:[%s2809_s17 + $0x20] sm:$0xff] %v2621_v16 }
  0x54   : > { %440 = vst [vmem:[%s2809_s17 + $0x28] sm:$0xff] %v2621_v16 }
  0x55   : > { %441 = vst [vmem:[%s2809_s17 + $0x30] sm:$0xff] %v2621_v16 }
  0x56   : > { %442 = vst [vmem:[%s2809_s17 + $0x38] sm:$0xff] %v2621_v16 }
  0x57   : > { %443 = vst [vmem:[%s2809_s17 + $0x40] sm:$0xff] %v2621_v16 }
  0x58   : > { %444 = vst [vmem:[%s2809_s17 + $0x48] sm:$0xff] %v2621_v16 }
  0x59   : > { %445 = vst [vmem:[%s2809_s17 + $0x50] sm:$0xff] %v2621_v16 }
  0x5a   : > { %446 = vst [vmem:[%s2809_s17 + $0x58] sm:$0xff] %v2621_v16 }
  0x5b   : > { %447 = vst [vmem:[%s2809_s17 + $0x60] sm:$0xff] %v2621_v16 }
  0x5c   : > { %448 = vst [vmem:[%s2809_s17 + $0x68] sm:$0xff] %v2621_v16 }
  0x5d   : > { %449 = vst [vmem:[%s2809_s17 + $0x70] sm:$0xff] %v2621_v16 }
  0x5e   : > { %450 = vst [vmem:[%s2809_s17 + $0x78] sm:$0xff] %v2621_v16 }
  0x5f   : > { %451 = vst [vmem:[%s2809_s17 + $0x80] sm:$0xff] %v2621_v16 }
  0x60   : > { %452 = vst [vmem:[%s2809_s17 + $0x88] sm:$0xff] %v2621_v16 }
  0x61   : > { %453 = vst [vmem:[%s2809_s17 + $0x90] sm:$0xff] %v2621_v16 }
  0x62   : > { %454 = vst [vmem:[%s2809_s17 + $0x98] sm:$0xff] %v2621_v16 }
  0x63   : > { %455 = vst [vmem:[%s2809_s17 + $0xa0] sm:$0xff] %v2621_v16 }
  0x64   : > { %456 = vst [vmem:[%s2809_s17 + $0xa8] sm:$0xff] %v2621_v16 }
  0x65   : > { %457 = vst [vmem:[%s2809_s17 + $0xb0] sm:$0xff] %v2621_v16 }
  0x66   : > { %458 = vst [vmem:[%s2809_s17 + $0xb8] sm:$0xff] %v2621_v16 }
  0x67   : > { %459 = vst [vmem:[%s2809_s17 + $0xc0] sm:$0xff] %v2621_v16 }
  0x68   : > { %460 = vst [vmem:[%s2809_s17 + $0xc8] sm:$0xff] %v2621_v16 }
  0x69   : > { %461 = vst [vmem:[%s2809_s17 + $0xd0] sm:$0xff] %v2621_v16 }
  0x6a   : > { %462 = vst [vmem:[%s2809_s17 + $0xd8] sm:$0xff] %v2621_v16 }
  0x6b   : > { %463 = vst [vmem:[%s2809_s17 + $0xe0] sm:$0xff] %v2621_v16 }
  0x6c   : > { %464 = vst [vmem:[%s2809_s17 + $0xe8] sm:$0xff] %v2621_v16 }
  0x6d   : > { %465 = vst [vmem:[%s2809_s17 + $0xf0] sm:$0xff] %v2621_v16 }
  0x6e   : > { %466 = vst [vmem:[%s2809_s17 + $0xf8] sm:$0xff] %v2621_v16 }
  0x6f PF: > { %v2341_v17 = vld [vmem:[%s3550_s3] sm:$0xff]  ;;  %vm587_vm0 = vcmask 130048   ;;  %v2326_v19 = vld [vmem:[%s2800_s13 + $0x8] sm:$0xff]  ;;  %v2327_v20 = vld [vmem:[%s2800_s13 + $0x10] sm:$0xff]  ;;  %p2232_p6 = scmp.ne.s32.totalorder %s2603_s10, 1 }
  0x70   : > { %v2325_v18 = vld [vmem:[%s2800_s13] sm:$0xff]  ;;  %643 = vmatpush.bf16.msra.mxu0 %v2341_v17  ;;  %2360 = vmatpush.bf16.msra.mxu3 %v2341_v17  ;;  %v2328_v21 = vld [vmem:[%s2800_s13 + $0x18] sm:$0xff]  ;;  %v2338_v22 = vld [vmem:[%s2800_s13 + $0x68] sm:$0xff]  ;;  %s3577_s26 = sshll.u32 (!%p2232_p6), %s2607_s11, 8 }
  0x71   : > { %v2329_v23 = vld [vmem:[%s2800_s13 + $0x20] sm:$0xff]  ;;  %v2339_v24 = vld [vmem:[%s2800_s13 + $0x70] sm:$0xff]  ;;  %v2330_v25 = vld [vmem:[%s2800_s13 + $0x28] sm:$0xff] }
  0x72   : > { %v2331_v26 = vld [vmem:[%s2800_s13 + $0x30] sm:$0xff]  ;;  %v2340_v27 = vld [vmem:[%s2800_s13 + $0x78] sm:$0xff]  ;;  %v2333_v29 = vld [vmem:[%s2800_s13 + $0x40] sm:$0xff] }
  0x73   : > { %2216 = vmatmul.msk.bf16.vlgmr.msra.gmra.mxu0 %vm587_vm0, %v2325_v18  ;;  %2229 = vmatmul.msk.bf16.vlgmr.msra.gmra.mxu3 %vm587_vm0, %v2338_v22  ;;  %v2332_v28 = vld [vmem:[%s2800_s13 + $0x38] sm:$0xff]  ;;  %v2334_v33 = vld [vmem:[%s2800_s13 + $0x48] sm:$0xff]  ;;  %v2335_v37 = vld [vmem:[%s2800_s13 + $0x50] sm:$0xff] }
  0x74   : > { %v2336_v41 = vld [vmem:[%s2800_s13 + $0x58] sm:$0xff]  ;;  %v2337_v45 = vld [vmem:[%s2800_s13 + $0x60] sm:$0xff] }
  0x75   : > { %v753_v10 = vld [vmem:[%s2807_s9 + $0x60] sm:$0xff] }
  0x76   : > { %v805_v12 = vunpack.c.0.s8 %v753_v10  ;;  %v807_v13 = vunpack.c.1.s8 %v753_v10  ;;  %v741_v17 = vld [vmem:[%s2807_s9] sm:$0xff] }
  0x77   : > { %v757_v18 = vunpack.c.0.s8 %v741_v17 }
  0x78   : > { %v869_v14 = vcvt.s32.f32 %v805_v12  ;;  %v871_v15 = vcvt.s32.f32 %v807_v13 }
  0x7a   : > { %v909_v16 = vpack.c.bf16 %v871_v15, %v869_v14 }
  0x83   : > { %2217 = vmatmul.msk.bf16.gmra.mxu0 %vm587_vm0, %v2326_v19  ;;  %2230 = vmatmul.msk.bf16.gmra.mxu3 %vm587_vm0, %v2339_v24  ;;  %v759_v19 = vunpack.c.1.s8 %v741_v17  ;;  %v809_v24 = vunpack.c.2.s8 %v753_v10 }
  0x85   : > { %v823_v22 = vcvt.s32.f32 %v759_v19 }
  0x93   : > { %2218 = vmatmul.msk.bf16.gmra.mxu0 %vm587_vm0, %v2327_v20  ;;  %2231 = vmatmul.msk.bf16.gmra.mxu3 %vm587_vm0, %v2340_v27  ;;  %v873_v27 = vcvt.s32.f32 %v809_v24 }
  0xa3   : > { %2219 = vmatmul.msk.bf16.gmra.mxu0 %vm587_vm0, %v2328_v21  ;;  %v821_v21 = vcvt.s32.f32 %v757_v18 }
  0xb3   : > { %2220 = vmatmul.msk.bf16.gmra.mxu0 %vm587_vm0, %v2329_v23  ;;  %v885_v23 = vpack.c.bf16 %v823_v22, %v821_v21 }
  0xc3   : > { %2221 = vmatmul.msk.bf16.gmra.mxu0 %vm587_vm0, %v2330_v25  ;;  %v811_v25 = vunpack.c.3.s8 %v753_v10  ;;  %v745_v10 = vld [vmem:[%s2807_s9 + $0x20] sm:$0xff] }
  0xc4   : > { %v773_v14 = vunpack.c.0.s8 %v745_v10  ;;  %v775_v15 = vunpack.c.1.s8 %v745_v10 }
  0xc6   : > { %v837_v21 = vcvt.s32.f32 %v773_v14  ;;  %v839_v22 = vcvt.s32.f32 %v775_v15 }
  0xd3   : > { %2222 = vmatmul.msk.bf16.gmra.mxu0 %vm587_vm0, %v2331_v26 }
  0xe3   : > { %2223 = vmatmul.msk.bf16.gmra.mxu0 %vm587_vm0, %v2332_v28  ;;  %v875_v28 = vcvt.s32.f32 %v811_v25  ;;  %v893_v25 = vpack.c.bf16 %v839_v22, %v837_v21 }
  0xf0   : > { %v645_v30 = vpop.f32.mrf.mxu0 }
  0xf3   : > { %2224 = vmatmul.msk.bf16.gmra.mxu0 %vm587_vm0, %v2333_v29  ;;  %v761_v29 = vunpack.c.2.s8 %v741_v17 }
  0xf6   : > { %v710_v47 = vpop.f32.mrf.mxu3 }
  0xf8   : > { %v647_v31 = vpop.f32.mrf.mxu0 }
  0xf9   : > { %v725_v32 = vpack.c.bf16 %v647_v31, %v645_v30  ;;  %v763_v30 = vunpack.c.3.s8 %v741_v17  ;;  %v911_v31 = vpack.c.bf16 %v875_v28, %v873_v27 }
  0xfe   : > { %v712_v49 = vpop.f32.mrf.mxu3 }
  0xff   : > { %v738_v61 = vpack.c.bf16 %v712_v49, %v710_v47 }
 0x100   : > { %v650_v34 = vpop.f32.mrf.mxu0 }
 0x103   : > { %2225 = vmatmul.msk.bf16.gmra.mxu0 %vm587_vm0, %v2334_v33  ;;  %v827_v33 = vcvt.s32.f32 %v763_v30 }
 0x106   : > { %v715_v51 = vpop.f32.mrf.mxu3 }
 0x108   : > { %v652_v35 = vpop.f32.mrf.mxu0 }
 0x109   : > { %v726_v36 = vpack.c.bf16 %v652_v35, %v650_v34 }
 0x10e   : > { %v717_v53 = vpop.f32.mrf.mxu3 }
 0x10f   : > { %v739_v59 = vpack.c.bf16 %v717_v53, %v715_v51 }
 0x110   : > { %v655_v38 = vpop.f32.mrf.mxu0 }
 0x113   : > { %2226 = vmatmul.msk.bf16.gmra.mxu0 %vm587_vm0, %v2335_v37 }
 0x116   : > { %v720_v55 = vpop.f32.mrf.mxu3 }
 0x118   : > { %v657_v39 = vpop.f32.mrf.mxu0 }
 0x119   : > { %v727_v40 = vpack.c.bf16 %v657_v39, %v655_v38  ;;  %v755_v38 = vld [vmem:[%s2807_s9 + $0x70] sm:$0xff] }
 0x11a   : > { %v743_v39 = vld [vmem:[%s2807_s9 + $0x10] sm:$0xff] }
 0x11e   : > { %v722_v57 = vpop.f32.mrf.mxu3 }
 0x11f   : > { %v740_v58 = vpack.c.bf16 %v722_v57, %v720_v55 }
 0x120   : > { %v660_v42 = vpop.f32.mrf.mxu0 }
 0x121   : > { %1038 = vmatpush.bf16.msra.mxu2 %v740_v58 }
 0x123   : > { %2227 = vmatmul.msk.bf16.gmra.mxu0 %vm587_vm0, %v2336_v41  ;;  %v813_v41 = vunpack.c.0.s8 %v755_v38 }
 0x125   : > { %1039 = vmatpush.bf16.msra.mxu2 %v739_v59 }
 0x128   : > { %v662_v43 = vpop.f32.mrf.mxu0 }
 0x129   : > { %v728_v44 = vpack.c.bf16 %v662_v43, %v660_v42  ;;  %1040 = vmatpush.bf16.msra.mxu2 %v738_v61  ;;  %v815_v42 = vunpack.c.1.s8 %v755_v38  ;;  %v765_v43 = vunpack.c.0.s8 %v743_v39 }
 0x12b   : > { %v879_v47 = vcvt.s32.f32 %v815_v42  ;;  %v829_v51 = vcvt.s32.f32 %v765_v43  ;;  %v756_v42 = vld [vmem:[%s2807_s9 + $0x78] sm:$0xff]  ;;  %v747_v43 = vld [vmem:[%s2807_s9 + $0x30] sm:$0xff] }
 0x130   : > { %v665_v46 = vpop.f32.mrf.mxu0 }
 0x133   : > { %2228 = vmatmul.msk.bf16.gmra.mxu0 %vm587_vm0, %v2337_v45 }
 0x138   : > { %v667_v48 = vpop.f32.mrf.mxu0 }
 0x139   : > { %v729_v3 = vpack.c.bf16 %v667_v48, %v665_v46  ;;  %v877_v46 = vcvt.s32.f32 %v813_v41 }
 0x140   : > { %v670_v50 = vpop.f32.mrf.mxu0 }
 0x148   : > { %v672_v52 = vpop.f32.mrf.mxu0 }
 0x149   : > { %v730_v2 = vpack.c.bf16 %v672_v52, %v670_v50  ;;  %v913_v50 = vpack.c.bf16 %v879_v47, %v877_v46  ;;  %v816_v46 = vunpack.c.1.s8 %v756_v42  ;;  %v781_v47 = vunpack.c.0.s8 %v747_v43 }
 0x150   : > { %v675_v54 = vpop.f32.mrf.mxu0 }
 0x158   : > { %v677_v56 = vpop.f32.mrf.mxu0 }
 0x159   : > { %v731_v0 = vpack.c.bf16 %v677_v56, %v675_v54 }
 0x160   : > { %v680_v60 = vpop.f32.mrf.mxu0 }
 0x168   : > { %v682_v62 = vpop.f32.mrf.mxu0 }
 0x169   : > { %v732_v63 = vpack.c.bf16 %v682_v62, %v680_v60  ;;  %v769_v62 = vunpack.c.2.s8 %v743_v39 }
 0x16b   : > { %949 = vmatpush.bf16.msra.mxu1 %v732_v63  ;;  %2361 = vmatpush.bf16.msrb.mxu3 %v732_v63  ;;  %v771_v63 = vunpack.c.3.s8 %v743_v39 }
 0x16f   : > { %950 = vmatpush.bf16.msra.mxu1 %v731_v0  ;;  %2362 = vmatpush.bf16.msrb.mxu3 %v731_v0 }
 0x170   : > { %v685_v1 = vpop.f32.mrf.mxu0 }
 0x173   : > { %951 = vmatpush.bf16.msra.mxu1 %v730_v2  ;;  %2363 = vmatpush.bf16.msrb.mxu3 %v730_v2 }
 0x177   : > { %952 = vmatpush.bf16.msra.mxu1 %v729_v3  ;;  %2364 = vmatpush.bf16.msrb.mxu3 %v729_v3  ;;  %v833_v3 = vcvt.s32.f32 %v769_v62 }
 0x178   : > { %v687_v4 = vpop.f32.mrf.mxu0 }
 0x179   : > { %v2881_v5 = vpack.c.bf16 %v687_v4, %v685_v1  ;;  %v835_v4 = vcvt.s32.f32 %v771_v63 }
 0x17b   : > { %953 = vmatpush.bf16.msra.mxu1 %v728_v44  ;;  %2365 = vmatpush.bf16.msrb.mxu3 %v728_v44  ;;  %v767_v44 = vunpack.c.1.s8 %v743_v39 }
 0x17d   : > { %v831_v52 = vcvt.s32.f32 %v767_v44  ;;  %v746_v44 = vld [vmem:[%s2807_s9 + $0x28] sm:$0xff] }
 0x17f   : > { %954 = vmatpush.bf16.msra.mxu1 %v727_v40  ;;  %2366 = vmatpush.bf16.msrb.mxu3 %v727_v40  ;;  %v742_v40 = vld [vmem:[%s2807_s9 + $0x8] sm:$0xff]  ;;  %v889_v56 = vpack.c.bf16 %v831_v52, %v829_v51  ;;  %v774_v51 = vunpack.c.0.s8 %v746_v44  ;;  %v776_v52 = vunpack.c.1.s8 %v746_v44 }
 0x180   : > { %v2883_v6 = vpop.f32.mrf.mxu0  ;;  %v758_v48 = vunpack.c.0.s8 %v742_v40  ;;  %v760_v49 = vunpack.c.1.s8 %v742_v40  ;;  %v762_v0 = vunpack.c.2.s8 %v742_v40  ;;  %v764_v1 = vunpack.c.3.s8 %v742_v40 }
 0x182   : > { %v822_v54 = vcvt.s32.f32 %v758_v48  ;;  %v824_v55 = vcvt.s32.f32 %v760_v49  ;;  %v783_v48 = vunpack.c.1.s8 %v747_v43 }
 0x183   : > { %955 = vmatpush.bf16.msra.mxu1 %v726_v36  ;;  %2367 = vmatpush.bf16.msrb.mxu3 %v726_v36 }
 0x184   : > { %v886_v57 = vpack.c.bf16 %v824_v55, %v822_v54  ;;  %v845_v54 = vcvt.s32.f32 %v781_v47  ;;  %v847_v55 = vcvt.s32.f32 %v783_v48 }
 0x187   : > { %956 = vmatpush.bf16.msra.mxu1 %v725_v32  ;;  %2368 = vmatpush.bf16.msrb.mxu3 %v725_v32  ;;  %v825_v32 = vcvt.s32.f32 %v761_v29 }
 0x188   : > { %v692_v7 = vpop.f32.mrf.mxu0 }
 0x189   : > { %v887_v35 = vpack.c.bf16 %v827_v33, %v825_v32  ;;  %v734_v53 = vpack.c.bf16 %v692_v7, %v2883_v6  ;;  %v826_v6 = vcvt.s32.f32 %v762_v0  ;;  %v828_v7 = vcvt.s32.f32 %v764_v1 }
 0x18a   : > { %1017 = vmatmul.bf16.vlgmr.msrb.gmra.mxu3 %v909_v16  ;;  %957 = vmatmul.bf16.vlgmr.msra.gmra.mxu1 %v885_v23  ;;  %v779_v32 = vunpack.c.3.s8 %v745_v10  ;;  %v785_v0 = vunpack.c.2.s8 %v747_v43  ;;  %v787_v1 = vunpack.c.3.s8 %v747_v43 }
 0x18b   : > { %2369 = vmatpush.bf16.msra.mxu3 %v740_v58  ;;  %v817_v58 = vunpack.c.2.s8 %v755_v38 }
 0x18d   : > { %v881_v60 = vcvt.s32.f32 %v817_v58  ;;  %v897_v58 = vpack.c.bf16 %v847_v55, %v845_v54  ;;  %v917_v55 = vld [vmem:[%s2809_s17] sm:$0xff] }
 0x18f   : > { %2370 = vmatpush.bf16.msra.mxu3 %v739_v59  ;;  %v819_v59 = vunpack.c.3.s8 %v755_v38 }
 0x190   : > { %v695_v8 = vpop.f32.mrf.mxu0 }
 0x193   : > { %2371 = vmatpush.bf16.msra.mxu3 %v738_v61  ;;  %v883_v61 = vcvt.s32.f32 %v819_v59 }
 0x195   : > { %v915_v2 = vpack.c.bf16 %v883_v61, %v881_v60  ;;  %v818_v60 = vunpack.c.2.s8 %v756_v42  ;;  %v820_v61 = vunpack.c.3.s8 %v756_v42 }
 0x197   : > { %v882_v62 = vcvt.s32.f32 %v818_v60  ;;  %v884_v63 = vcvt.s32.f32 %v820_v61 }
 0x198   : > { %v697_v9 = vpop.f32.mrf.mxu0 }
 0x199   : > { %v735_v45 = vpack.c.bf16 %v697_v9, %v695_v8  ;;  %v888_v8 = vpack.c.bf16 %v828_v7, %v826_v6  ;;  %v754_v9 = vld [vmem:[%s2807_s9 + $0x68] sm:$0xff]  ;;  %v849_v6 = vcvt.s32.f32 %v785_v0  ;;  %v851_v7 = vcvt.s32.f32 %v787_v1 }
 0x19a   : > { %1022 = vmatmul.bf16.gmra.mxu3 %v911_v31  ;;  %962 = vmatmul.bf16.gmra.mxu1 %v887_v35  ;;  %v806_v12 = vunpack.c.0.s8 %v754_v9  ;;  %v808_v13 = vunpack.c.1.s8 %v754_v9  ;;  %v810_v27 = vunpack.c.2.s8 %v754_v9  ;;  %v812_v28 = vunpack.c.3.s8 %v754_v9 }
 0x19b   : > { %v777_v31 = vunpack.c.2.s8 %v745_v10  ;;  %v899_v9 = vpack.c.bf16 %v851_v7, %v849_v6  ;;  %v918_v6 = vld [vmem:[%s2809_s17 + $0x8] sm:$0xff] }
 0x19c   : > { %v870_v16 = vcvt.s32.f32 %v806_v12  ;;  %v872_v17 = vcvt.s32.f32 %v808_v13  ;;  %v874_v29 = vcvt.s32.f32 %v810_v27  ;;  %v876_v30 = vcvt.s32.f32 %v812_v28  ;;  %v748_v12 = vld [vmem:[%s2807_s9 + $0x38] sm:$0xff] }
 0x19d   : > { %v782_v15 = vunpack.c.0.s8 %v748_v12  ;;  %v786_v27 = vunpack.c.2.s8 %v748_v12  ;;  %v788_v28 = vunpack.c.3.s8 %v748_v12 }
 0x19e   : > { %v912_v35 = vpack.c.bf16 %v876_v30, %v874_v29 }
 0x19f   : > { %v850_v29 = vcvt.s32.f32 %v786_v27  ;;  %v852_v30 = vcvt.s32.f32 %v788_v28 }
 0x1a0   : > { %v700_v11 = vpop.f32.mrf.mxu0 }
 0x1a8   : > { %v702_v20 = vpop.f32.mrf.mxu0 }
 0x1a9   : > { %v736_v37 = vpack.c.bf16 %v702_v20, %v700_v11  ;;  %v744_v11 = vld [vmem:[%s2807_s9 + $0x18] sm:$0xff]  ;;  %v910_v20 = vpack.c.bf16 %v872_v17, %v870_v16  ;;  %v784_v16 = vunpack.c.1.s8 %v748_v12 }
 0x1aa   : > { %1027 = vmatmul.bf16.gmra.mxu3 %v913_v50  ;;  %967 = vmatmul.bf16.gmra.mxu1 %v889_v56  ;;  %v766_v18 = vunpack.c.0.s8 %v744_v11  ;;  %v768_v19 = vunpack.c.1.s8 %v744_v11  ;;  %v770_v33 = vunpack.c.2.s8 %v744_v11  ;;  %v880_v50 = vcvt.s32.f32 %v816_v46  ;;  %v752_v12 = vld [vmem:[%s2807_s9 + $0x58] sm:$0xff] }
 0x1ab   : > { %v838_v56 = vcvt.s32.f32 %v774_v51 }
 0x1ac   : > { %v830_v23 = vcvt.s32.f32 %v766_v18  ;;  %v832_v24 = vcvt.s32.f32 %v768_v19  ;;  %v834_v38 = vcvt.s32.f32 %v770_v33  ;;  %v846_v19 = vcvt.s32.f32 %v782_v15 }
 0x1b0   : > { %v705_v26 = vpop.f32.mrf.mxu0 }
 0x1b8   : > { %v707_v34 = vpop.f32.mrf.mxu0 }
 0x1b9   : > { %v737_v36 = vpack.c.bf16 %v707_v34, %v705_v26  ;;  %v890_v26 = vpack.c.bf16 %v832_v24, %v830_v23  ;;  %v772_v34 = vunpack.c.3.s8 %v744_v11  ;;  %v749_v11 = vld [vmem:[%s2807_s9 + $0x40] sm:$0xff] }
 0x1ba   : > { %1032 = vmatmul.bf16.gmra.mxu3 %v915_v2  ;;  %v778_v2 = vunpack.c.2.s8 %v746_v44  ;;  %v789_v13 = vunpack.c.0.s8 %v749_v11  ;;  %v791_v14 = vunpack.c.1.s8 %v749_v11 }
 0x1bb   : > { %1041 = vmatpush.bf16.msra.mxu2 %v737_v36  ;;  %2372 = vmatpush.bf16.msra.mxu3 %v737_v36  ;;  %v841_v36 = vcvt.s32.f32 %v777_v31  ;;  %v836_v39 = vcvt.s32.f32 %v772_v34  ;;  %v793_v31 = vunpack.c.2.s8 %v749_v11 }
 0x1bc   : > { %v853_v17 = vcvt.s32.f32 %v789_v13  ;;  %v855_v18 = vcvt.s32.f32 %v791_v14  ;;  %v919_v14 = vld [vmem:[%s2809_s17 + $0x10] sm:$0xff] }
 0x1bd   : > { %v892_v41 = vpack.c.bf16 %v836_v39, %v834_v38  ;;  %v857_v33 = vcvt.s32.f32 %v793_v31  ;;  %v750_v39 = vld [vmem:[%s2807_s9 + $0x48] sm:$0xff] }
 0x1be   : > { %v901_v21 = vpack.c.bf16 %v855_v18, %v853_v17  ;;  %v792_v43 = vunpack.c.1.s8 %v750_v39  ;;  %v798_v17 = vunpack.c.0.s8 %v752_v12  ;;  %v800_v18 = vunpack.c.1.s8 %v752_v12 }
 0x1bf   : > { %1042 = vmatpush.bf16.msra.mxu2 %v736_v37  ;;  %2373 = vmatpush.bf16.msra.mxu3 %v736_v37  ;;  %v843_v37 = vcvt.s32.f32 %v779_v32  ;;  %v795_v32 = vunpack.c.3.s8 %v749_v11 }
 0x1c0   : > { %v856_v46 = vcvt.s32.f32 %v792_v43 }
 0x1c1   : > { %v895_v40 = vpack.c.bf16 %v843_v37, %v841_v36  ;;  %v859_v34 = vcvt.s32.f32 %v795_v32  ;;  %v900_v37 = vpack.c.bf16 %v852_v30, %v850_v29  ;;  %v941_v32 = vld [vmem:[%s2809_s17 + $0xc0] sm:$0xff] }
 0x1c3   : > { %1043 = vmatpush.bf16.msra.mxu2 %v735_v45  ;;  %2374 = vmatpush.bf16.msra.mxu3 %v735_v45  ;;  %v814_v45 = vunpack.c.0.s8 %v756_v42  ;;  %v903_v38 = vpack.c.bf16 %v859_v34, %v857_v33  ;;  %v790_v42 = vunpack.c.0.s8 %v750_v39 }
 0x1c5   : > { %v878_v49 = vcvt.s32.f32 %v814_v45  ;;  %v854_v45 = vcvt.s32.f32 %v790_v42  ;;  %v804_v42 = vunpack.c.3.s8 %v752_v12 }
 0x1c7   : > { %1044 = vmatpush.bf16.msra.mxu2 %v734_v53  ;;  %2375 = vmatpush.bf16.msra.mxu3 %v734_v53  ;;  %v914_v53 = vpack.c.bf16 %v880_v50, %v878_v49 }
 0x1cb   : > { %1045 = vmatpush.bf16.msra.mxu2 %v2881_v5  ;;  %2376 = vmatpush.bf16.msra.mxu3 %v2881_v5  ;;  %v891_v5 = vpack.c.bf16 %v835_v4, %v833_v3  ;;  %v780_v3 = vunpack.c.3.s8 %v746_v44  ;;  %v916_v4 = vpack.c.bf16 %v884_v63, %v882_v62  ;;  %v751_v44 = vld [vmem:[%s2807_s9 + $0x50] sm:$0xff] }
 0x1cc   : > { %v797_v47 = vunpack.c.0.s8 %v751_v44  ;;  %v799_v48 = vunpack.c.1.s8 %v751_v44  ;;  %v801_v1 = vunpack.c.2.s8 %v751_v44 }
 0x1cd   : > { %972 = vmatmul.bf16.gmra.mxu1 %v891_v5  ;;  %v842_v5 = vcvt.s32.f32 %v778_v2  ;;  %v803_v2 = vunpack.c.3.s8 %v751_v44  ;;  %v942_v44 = vld [vmem:[%s2809_s17 + $0xc8] sm:$0xff] }
 0x1ce   : > { %1046 = vmatmul.bf16.vlgmr.msra.gmra.mxu2 %v886_v57  ;;  %1106 = vmatmul.bf16.vlgmr.msra.gmra.mxu3 %v910_v20  ;;  %v840_v57 = vcvt.s32.f32 %v776_v52  ;;  %v848_v20 = vcvt.s32.f32 %v784_v16  ;;  %v861_v49 = vcvt.s32.f32 %v797_v47  ;;  %v863_v50 = vcvt.s32.f32 %v799_v48 }
 0x1cf   : > { %v902_v52 = vpack.c.bf16 %v856_v46, %v854_v45  ;;  %v868_v48 = vcvt.s32.f32 %v804_v42 }
 0x1d0   : > { %v894_v59 = vpack.c.bf16 %v840_v57, %v838_v56  ;;  %v898_v24 = vpack.c.bf16 %v848_v20, %v846_v19 }
 0x1dd   : > { %977 = vmatmul.bf16.gmra.mxu1 %v893_v25 }
 0x1de   : > { %1051 = vmatmul.bf16.gmra.mxu2 %v888_v8  ;;  %1111 = vmatmul.bf16.gmra.mxu3 %v912_v35  ;;  %v844_v8 = vcvt.s32.f32 %v780_v3  ;;  %v865_v3 = vcvt.s32.f32 %v801_v1 }
 0x1e0   : > { %v896_v10 = vpack.c.bf16 %v844_v8, %v842_v5 }
 0x1ed   : > { %982 = vmatmul.bf16.gmra.mxu1 %v895_v40 }
 0x1ee   : > { %1056 = vmatmul.bf16.gmra.mxu2 %v890_v26  ;;  %1116 = vmatmul.bf16.gmra.mxu3 %v914_v53  ;;  %v905_v53 = vpack.c.bf16 %v863_v50, %v861_v49  ;;  %v922_v49 = vld [vmem:[%s2809_s17 + $0x28] sm:$0xff] }
 0x1fd   : > { %987 = vmatmul.bf16.gmra.mxu1 %v897_v58  ;;  %v794_v58 = vunpack.c.2.s8 %v750_v39 }
 0x1fe   : > { %1061 = vmatmul.bf16.gmra.mxu2 %v892_v41  ;;  %1121 = vmatmul.bf16.gmra.mxu3 %v916_v4  ;;  %v867_v4 = vcvt.s32.f32 %v803_v2 }
 0x1ff   : > { %v858_v63 = vcvt.s32.f32 %v794_v58 }
 0x207   : > { %v958_v22 = vpop.f32.mrf.mxu1 }
 0x20d   : > { %992 = vmatmul.bf16.gmra.mxu1 %v899_v9  ;;  %v2901_v23 = vpop.f32.mrf.mxu3 }
 0x20e   : > { %1066 = vmatmul.bf16.gmra.mxu2 %v894_v59  ;;  %v796_v59 = vunpack.c.3.s8 %v750_v39  ;;  %v802_v39 = vunpack.c.2.s8 %v752_v12  ;;  %v925_v12 = vld [vmem:[%s2809_s17 + $0x40] sm:$0xff] }
 0x20f   : > { %v960_v25 = vpop.f32.mrf.mxu1 }
 0x210   : > { %v860_v0 = vcvt.s32.f32 %v796_v59  ;;  %v923_v59 = vld [vmem:[%s2809_s17 + $0x30] sm:$0xff] }
 0x212   : > { %v904_v8 = vpack.c.bf16 %v860_v0, %v858_v63  ;;  %v944_v0 = vld [vmem:[%s2809_s17 + $0xd8] sm:$0xff] }
 0x215   : > { %v2903_v26 = vpop.f32.mrf.mxu3 }
 0x217   : > { %v963_v35 = vpop.f32.mrf.mxu1 }
 0x21d   : > { %997 = vmatmul.bf16.gmra.mxu1 %v901_v21  ;;  %v2905_v36 = vpop.f32.mrf.mxu3  ;;  %v862_v21 = vcvt.s32.f32 %v798_v17  ;;  %v946_v17 = vld [vmem:[%s2809_s17 + $0xe8] sm:$0xff] }
 0x21e   : > { %1071 = vmatmul.bf16.gmra.mxu2 %v896_v10  ;;  %v907_v10 = vpack.c.bf16 %v867_v4, %v865_v3 }
 0x21f   : > { %v965_v40 = vpop.f32.mrf.mxu1 }
 0x225   : > { %v2908_v41 = vpop.f32.mrf.mxu3 }
 0x227   : > { %v968_v54 = vpop.f32.mrf.mxu1 }
 0x22d   : > { %1002 = vmatmul.bf16.gmra.mxu1 %v903_v38  ;;  %v2911_v51 = vpop.f32.mrf.mxu3 }
 0x22e   : > { %1076 = vmatmul.bf16.gmra.mxu2 %v898_v24  ;;  %v920_v24 = vld [vmem:[%s2809_s17 + $0x18] sm:$0xff] }
 0x22f   : > { %v970_v62 = vpop.f32.mrf.mxu1 }
 0x235   : > { %v2914_v60 = vpop.f32.mrf.mxu3 }
 0x23d   : > { %1007 = vmatmul.bf16.gmra.mxu1 %v905_v53  ;;  %v2918_v9 = vpop.f32.mrf.mxu3 }
 0x23e   : > { %1081 = vmatmul.bf16.gmra.mxu2 %v900_v37 }
 0x245   : > { %v2923_v19 = vpop.f32.mrf.mxu3 }
 0x24a   : > { %v973_v13 = vpop.f32.mrf.mxu1 }
 0x24d   : > { %1012 = vmatmul.bf16.gmra.mxu1 %v907_v10  ;;  %v945_v10 = vld [vmem:[%s2809_s17 + $0xe0] sm:$0xff] }
 0x24e   : > { %1086 = vmatmul.bf16.gmra.mxu2 %v902_v52 }
 0x251   : > { %v1047_v56 = vpop.f32.mrf.mxu2  ;;  %v1107_v30 = vpop.f32.mrf.mxu3 }
 0x252   : > { %v1048_v57 = vadd.f32 %v1047_v56, %v958_v22  ;;  %v864_v22 = vcvt.s32.f32 %v800_v18  ;;  %v975_v27 = vpop.f32.mrf.mxu1  ;;  %v1108_v33 = vadd.f32 %v1107_v30, %v2901_v23  ;;  %v866_v23 = vcvt.s32.f32 %v802_v39 }
 0x254   : > { %v1127_v61 = vadd.f32 %v1048_v57, %v917_v55  ;;  %v906_v29 = vpack.c.bf16 %v864_v22, %v862_v21  ;;  %v1151_v34 = vadd.f32 %v1108_v33, %v941_v32  ;;  %v908_v53 = vpack.c.bf16 %v868_v48, %v866_v23  ;;  %v930_v48 = vld [vmem:[%s2809_s17 + $0x68] sm:$0xff] }
 0x256   : > { %1159 = vst [vmem:[%s2809_s17] sm:$0xff] %v1127_v61 }
 0x257   : > { %1183 = vst [vmem:[%s2809_s17 + $0xc0] sm:$0xff] %v1151_v34 }
 0x259   : > { %v1049_v7 = vpop.f32.mrf.mxu2 }
 0x25a   : > { %v1050_v5 = vadd.f32 %v1049_v7, %v960_v25  ;;  %v978_v43 = vpop.f32.mrf.mxu1 }
 0x25c   : > { %v1128_v11 = vadd.f32 %v1050_v5, %v918_v6 }
 0x25e   : > { %1160 = vst [vmem:[%s2809_s17 + $0x8] sm:$0xff] %v1128_v11  ;;  %1091 = vmatmul.bf16.gmra.mxu2 %v904_v8 }
 0x261   : > { %v1052_v15 = vpop.f32.mrf.mxu2 }
 0x262   : > { %v1053_v16 = vadd.f32 %v1052_v15, %v963_v35  ;;  %v921_v35 = vld [vmem:[%s2809_s17 + $0x20] sm:$0xff]  ;;  %v980_v56 = vpop.f32.mrf.mxu1 }
 0x264   : > { %v1129_v20 = vadd.f32 %v1053_v16, %v919_v14 }
 0x266   : > { %1161 = vst [vmem:[%s2809_s17 + $0x10] sm:$0xff] %v1129_v20 }
 0x269   : > { %v1054_v25 = vpop.f32.mrf.mxu2 }
 0x26a   : > { %v1055_v28 = vadd.f32 %v1054_v25, %v965_v40  ;;  %v1109_v40 = vpop.f32.mrf.mxu3  ;;  %v983_v4 = vpop.f32.mrf.mxu1 }
 0x26b   : > { %v1110_v45 = vadd.f32 %v1109_v40, %v2903_v26  ;;  %v943_v26 = vld [vmem:[%s2809_s17 + $0xd0] sm:$0xff]  ;;  %v928_v40 = vld [vmem:[%s2809_s17 + $0x58] sm:$0xff] }
 0x26c   : > { %v1130_v31 = vadd.f32 %v1055_v28, %v920_v24 }
 0x26d   : > { %v1152_v47 = vadd.f32 %v1110_v45, %v942_v44 }
 0x26e   : > { %1162 = vst [vmem:[%s2809_s17 + $0x18] sm:$0xff] %v1130_v31  ;;  %1096 = vmatmul.bf16.gmra.mxu2 %v906_v29  ;;  %v947_v29 = vld [vmem:[%s2809_s17 + $0xf0] sm:$0xff] }
 0x26f   : > { %1184 = vst [vmem:[%s2809_s17 + $0xc8] sm:$0xff] %v1152_v47  ;;  %v927_v31 = vld [vmem:[%s2809_s17 + $0x50] sm:$0xff] }
 0x271   : > { %v1057_v37 = vpop.f32.mrf.mxu2 }
 0x272   : > { %v1058_v38 = vadd.f32 %v1057_v37, %v968_v54  ;;  %v1112_v54 = vpop.f32.mrf.mxu3  ;;  %v985_v14 = vpop.f32.mrf.mxu1 }
 0x273   : > { %v1113_v57 = vadd.f32 %v1112_v54, %v2905_v36  ;;  %v924_v36 = vld [vmem:[%s2809_s17 + $0x38] sm:$0xff]  ;;  %v931_v54 = vld [vmem:[%s2809_s17 + $0x70] sm:$0xff] }
 0x274   : > { %v1131_v46 = vadd.f32 %v1058_v38, %v921_v35  ;;  %v948_v35 = vld [vmem:[%s2809_s17 + $0xf8] sm:$0xff] }
 0x275   : > { %v1153_v58 = vadd.f32 %v1113_v57, %v943_v26 }
 0x276   : > { %1163 = vst [vmem:[%s2809_s17 + $0x20] sm:$0xff] %v1131_v46  ;;  %v929_v46 = vld [vmem:[%s2809_s17 + $0x60] sm:$0xff] }
 0x277   : > { %1185 = vst [vmem:[%s2809_s17 + $0xd0] sm:$0xff] %v1153_v58  ;;  %v932_v58 = vld [vmem:[%s2809_s17 + $0x78] sm:$0xff] }
 0x279   : > { %v1059_v50 = vpop.f32.mrf.mxu2 }
 0x27a   : > { %v1060_v52 = vadd.f32 %v1059_v50, %v970_v62  ;;  %v1114_v62 = vpop.f32.mrf.mxu3 }
 0x27b   : > { %v1115_v1 = vadd.f32 %v1114_v62, %v2908_v41 }
 0x27c   : > { %v1132_v55 = vadd.f32 %v1060_v52, %v922_v49 }
 0x27d   : > { %v1154_v3 = vadd.f32 %v1115_v1, %v944_v0  ;;  %v933_v0 = vld [vmem:[%s2809_s17 + $0x80] sm:$0xff] }
 0x27e   : > { %1164 = vst [vmem:[%s2809_s17 + $0x28] sm:$0xff] %v1132_v55  ;;  %1101 = vmatmul.bf16.gmra.mxu2 %v908_v53 }
 0x27f   : > { %1186 = vst [vmem:[%s2809_s17 + $0xd8] sm:$0xff] %v1154_v3 }
 0x281   : > { %v1062_v61 = vpop.f32.mrf.mxu2 }
 0x282   : > { %v1063_v63 = vadd.f32 %v1062_v61, %v973_v13  ;;  %v1117_v5 = vpop.f32.mrf.mxu3 }
 0x283   : > { %v1118_v11 = vadd.f32 %v1117_v5, %v2911_v51  ;;  %v926_v51 = vld [vmem:[%s2809_s17 + $0x48] sm:$0xff] }
 0x284   : > { %v1133_v2 = vadd.f32 %v1063_v63, %v923_v59 }
 0x285   : > { %v1155_v41 = vadd.f32 %v1118_v11, %v945_v10  ;;  %v935_v10 = vld [vmem:[%s2809_s17 + $0x90] sm:$0xff] }
 0x286   : > { %1165 = vst [vmem:[%s2809_s17 + $0x30] sm:$0xff] %v1133_v2 }
 0x287   : > { %1187 = vst [vmem:[%s2809_s17 + $0xe0] sm:$0xff] %v1155_v41 }
 0x289   : > { %v1064_v6 = vpop.f32.mrf.mxu2 }
 0x28a   : > { %v1065_v7 = vadd.f32 %v1064_v6, %v975_v27  ;;  %v1119_v16 = vpop.f32.mrf.mxu3  ;;  %v988_v27 = vpop.f32.mrf.mxu1 }
 0x28b   : > { %v1120_v18 = vadd.f32 %v1119_v16, %v2914_v60 }
 0x28c   : > { %v1134_v8 = vadd.f32 %v1065_v7, %v924_v36  ;;  %v934_v36 = vld [vmem:[%s2809_s17 + $0x88] sm:$0xff] }
 0x28d   : > { %v1156_v21 = vadd.f32 %v1120_v18, %v946_v17  ;;  %v937_v18 = vld [vmem:[%s2809_s17 + $0xa0] sm:$0xff] }
 0x28e   : > { %1166 = vst [vmem:[%s2809_s17 + $0x38] sm:$0xff] %v1134_v8 }
 0x28f   : > { %1188 = vst [vmem:[%s2809_s17 + $0xe8] sm:$0xff] %v1156_v21 }
 0x291   : > { %v1067_v13 = vpop.f32.mrf.mxu2 }
 0x292   : > { %v1068_v15 = vadd.f32 %v1067_v13, %v978_v43  ;;  %v1122_v25 = vpop.f32.mrf.mxu3  ;;  %v990_v39 = vpop.f32.mrf.mxu1  ;;  %v936_v13 = vld [vmem:[%s2809_s17 + $0x98] sm:$0xff] }
 0x293   : > { %v1123_v30 = vadd.f32 %v1122_v25, %v2918_v9 }
 0x294   : > { %v1135_v20 = vadd.f32 %v1068_v15, %v925_v12 }
 0x295   : > { %v1157_v60 = vadd.f32 %v1123_v30, %v947_v29  ;;  %v939_v30 = vld [vmem:[%s2809_s17 + $0xb0] sm:$0xff] }
 0x296   : > { %1167 = vst [vmem:[%s2809_s17 + $0x40] sm:$0xff] %v1135_v20 }
 0x297   : > { %1189 = vst [vmem:[%s2809_s17 + $0xf0] sm:$0xff] %v1157_v60 }
 0x299   : > { %v1069_v22 = vpop.f32.mrf.mxu2 }
 0x29a   : > { %v1070_v24 = vadd.f32 %v1069_v22, %v980_v56  ;;  %v1124_v34 = vpop.f32.mrf.mxu3  ;;  %v993_v45 = vpop.f32.mrf.mxu1 }
 0x29b   : > { %v1125_v37 = vadd.f32 %v1124_v34, %v2923_v19  ;;  %v940_v34 = vld [vmem:[%s2809_s17 + $0xb8] sm:$0xff] }
 0x29c   : > { %v1136_v28 = vadd.f32 %v1070_v24, %v926_v51  ;;  %v938_v24 = vld [vmem:[%s2809_s17 + $0xa8] sm:$0xff] }
 0x29d   : > { %v1158_v42 = vadd.f32 %v1125_v37, %v948_v35 }
 0x29e   : > { %1168 = vst [vmem:[%s2809_s17 + $0x48] sm:$0xff] %v1136_v28 }
 0x29f   : > { %1190 = vst [vmem:[%s2809_s17 + $0xf8] sm:$0xff] %v1158_v42 }
 0x2a1   : > { %v1072_v32 = vpop.f32.mrf.mxu2 }
 0x2a2   : > { %v1073_v33 = vadd.f32 %v1072_v32, %v983_v4  ;;  %v995_v50 = vpop.f32.mrf.mxu1 }
 0x2a4   : > { %v1137_v38 = vadd.f32 %v1073_v33, %v927_v31 }
 0x2a6   : > { %1169 = vst [vmem:[%s2809_s17 + $0x50] sm:$0xff] %v1137_v38 }
 0x2a9   : > { %v1074_v9 = vpop.f32.mrf.mxu2 }
 0x2aa   : > { %v1075_v43 = vadd.f32 %v1074_v9, %v985_v14  ;;  %v998_v26 = vpop.f32.mrf.mxu1 }
 0x2ac   : > { %v1138_v44 = vadd.f32 %v1075_v43, %v928_v40 }
 0x2ae   : > { %1170 = vst [vmem:[%s2809_s17 + $0x58] sm:$0xff] %v1138_v44 }
 0x2b1   : > { %v1077_v47 = vpop.f32.mrf.mxu2 }
 0x2b2   : > { %v1078_v19 = vadd.f32 %v1077_v47, %v988_v27  ;;  %v1000_v62 = vpop.f32.mrf.mxu1 }
 0x2b4   : > { %v1139_v23 = vadd.f32 %v1078_v19, %v929_v46 }
 0x2b6   : > { %1171 = vst [vmem:[%s2809_s17 + $0x60] sm:$0xff] %v1139_v23 }
 0x2b9   : > { %v1079_v49 = vpop.f32.mrf.mxu2 }
 0x2ba   : > { %v1080_v52 = vadd.f32 %v1079_v49, %v990_v39  ;;  %v1003_v4 = vpop.f32.mrf.mxu1 }
 0x2bc   : > { %v1140_v53 = vadd.f32 %v1080_v52, %v930_v48 }
 0x2be   : > { %1172 = vst [vmem:[%s2809_s17 + $0x68] sm:$0xff] %v1140_v53 }
 0x2c1   : > { %v1082_v55 = vpop.f32.mrf.mxu2 }
 0x2c2   : > { %v1083_v56 = vadd.f32 %v1082_v55, %v993_v45  ;;  %v1005_v8 = vpop.f32.mrf.mxu1 }
 0x2c4   : > { %v1141_v57 = vadd.f32 %v1083_v56, %v931_v54 }
 0x2c6   : > { %1173 = vst [vmem:[%s2809_s17 + $0x70] sm:$0xff] %v1141_v57 }
 0x2c9   : > { %v1084_v59 = vpop.f32.mrf.mxu2 }
 0x2ca   : > { %v1085_v61 = vadd.f32 %v1084_v59, %v995_v50  ;;  %v1008_v16 = vpop.f32.mrf.mxu1 }
 0x2cc   : > { %v1142_v63 = vadd.f32 %v1085_v61, %v932_v58 }
 0x2ce   : > { %1174 = vst [vmem:[%s2809_s17 + $0x78] sm:$0xff] %v1142_v63 }
 0x2d1   : > { %v1087_v1 = vpop.f32.mrf.mxu2 }
 0x2d2   : > { %v1088_v2 = vadd.f32 %v1087_v1, %v998_v26  ;;  %v1010_v22 = vpop.f32.mrf.mxu1 }
 0x2d4   : > { %v1143_v3 = vadd.f32 %v1088_v2, %v933_v0 }
 0x2d6   : > { %1175 = vst [vmem:[%s2809_s17 + $0x80] sm:$0xff] %v1143_v3 }
 0x2d9   : > { %v1089_v6 = vpop.f32.mrf.mxu2 }
 0x2da   : > { %v1090_v7 = vadd.f32 %v1089_v6, %v1000_v62  ;;  %v1013_v29 = vpop.f32.mrf.mxu1 }
 0x2dc   : > { %v1144_v5 = vadd.f32 %v1090_v7, %v934_v36 }
 0x2de   : > { %1176 = vst [vmem:[%s2809_s17 + $0x88] sm:$0xff] %v1144_v5 }
 0x2e1   : > { %v1092_v11 = vpop.f32.mrf.mxu2 }
 0x2e2   : > { %v1093_v41 = vadd.f32 %v1092_v11, %v1003_v4  ;;  %v1015_v33 = vpop.f32.mrf.mxu1 }
 0x2e4   : > { %v1145_v12 = vadd.f32 %v1093_v41, %v935_v10 }
 0x2e6   : > { %1177 = vst [vmem:[%s2809_s17 + $0x90] sm:$0xff] %v1145_v12 }
 0x2e9   : > { %v1094_v14 = vpop.f32.mrf.mxu2 }
 0x2ea   : > { %v1095_v15 = vadd.f32 %v1094_v14, %v1005_v8 }
 0x2ec   : > { %v1146_v17 = vadd.f32 %v1095_v15, %v936_v13 }
 0x2ee   : > { %1178 = vst [vmem:[%s2809_s17 + $0x98] sm:$0xff] %v1146_v17 }
 0x2f1   : > { %v1097_v20 = vpop.f32.mrf.mxu2 }
 0x2f2   : > { %v1098_v21 = vadd.f32 %v1097_v20, %v1008_v16 }
 0x2f4   : > { %v1147_v51 = vadd.f32 %v1098_v21, %v937_v18 }
 0x2f6   : > { %1179 = vst [vmem:[%s2809_s17 + $0xa0] sm:$0xff] %v1147_v51 }
 0x2f9   : > { %v1099_v25 = vpop.f32.mrf.mxu2 }
 0x2fa   : > { %v1100_v27 = vadd.f32 %v1099_v25, %v1010_v22 }
 0x2fc   : > { %v1148_v28 = vadd.f32 %v1100_v27, %v938_v24 }
 0x2fe   : > { %1180 = vst [vmem:[%s2809_s17 + $0xa8] sm:$0xff] %v1148_v28 }
 0x301   : > { %v1102_v60 = vpop.f32.mrf.mxu2 }
 0x302   : > { %v1103_v31 = vadd.f32 %v1102_v60, %v1013_v29 }
 0x304   : > { %v1149_v32 = vadd.f32 %v1103_v31, %v939_v30 }
 0x306   : > { %1181 = vst [vmem:[%s2809_s17 + $0xb0] sm:$0xff] %v1149_v32 }
 0x309   : > { %v1104_v35 = vpop.f32.mrf.mxu2 }
 0x30a   : > { %v1105_v37 = vadd.f32 %v1104_v35, %v1015_v33  ;;  %1194 = sbr.rel (%p2232_p6) target bundleno = 1042 (0x412), region = 79 }
 0x30c   : > { %v1150_v38 = vadd.f32 %v1105_v37, %v940_v34 }
 0x30e   : > { %1182 = vst [vmem:[%s2809_s17 + $0xb8] sm:$0xff] %v1150_v38 }
 0x30f   : > { %v2358_v39 = vld [vmem:[%s3551_s4] sm:$0xff]  ;;  %v2343_v44 = vld [vmem:[%s2805_s27 + $0x8] sm:$0xff]  ;;  %v2344_v19 = vld [vmem:[%s2805_s27 + $0x10] sm:$0xff]  ;;  %v1588_v55 = vlaneseq  ;;  %v3039_v59 = vstv %s3577_s26 }
 0x310   : > { %v2342_v42 = vld [vmem:[%s2805_s27] sm:$0xff]  ;;  %1374 = vmatpush.bf16.msra.mxu0 %v2358_v39  ;;  %2377 = vmatpush.bf16.msra.mxu1 %v2358_v39  ;;  %v2347_v45 = vld [vmem:[%s2805_s27 + $0x28] sm:$0xff]  ;;  %v2348_v23 = vld [vmem:[%s2805_s27 + $0x30] sm:$0xff] }
 0x311   : > { %v2346_v40 = vld [vmem:[%s2805_s27 + $0x20] sm:$0xff]  ;;  %2378 = vmatpush.bf16.msra.mxu2 %v2358_v39  ;;  %2379 = vmatpush.bf16.msra.mxu3 %v2358_v39  ;;  %v2351_v46 = vld [vmem:[%s2805_s27 + $0x48] sm:$0xff]  ;;  %v2352_v48 = vld [vmem:[%s2805_s27 + $0x50] sm:$0xff]  ;;  %v3034_v57 = vshrl.u32 %v1588_v55, 7 }
 0x312   : > { %v2350_v9 = vld [vmem:[%s2805_s27 + $0x40] sm:$0xff]  ;;  %v2355_v47 = vld [vmem:[%s2805_s27 + $0x68] sm:$0xff]  ;;  %v2356_v49 = vld [vmem:[%s2805_s27 + $0x70] sm:$0xff] }
 0x313   : > { %2301 = vmatmul.msk.bf16.vlgmr.msra.gmra.mxu0 %vm587_vm0, %v2342_v42  ;;  %2305 = vmatmul.msk.bf16.vlgmr.msra.gmra.mxu1 %vm587_vm0, %v2346_v40  ;;  %v2354_v43 = vld [vmem:[%s2805_s27 + $0x60] sm:$0xff]  ;;  %v2345_v50 = vld [vmem:[%s2805_s27 + $0x18] sm:$0xff]  ;;  %v1597_v63 = vadd.s32 64, %v3034_v57  ;;  %v1622_v1 = vadd.s32 %v3039_v59, %v3034_v57  ;;  %v1590_v2 = vadd.s32 8, %v3034_v57  ;;  %v1489_v3 = vld [vmem:[%s2809_s17 + $0x8] sm:$0xff]  ;;  %v1598_v12 = vadd.s32 72, %v3034_v57 }
 0x314   : > { %2309 = vmatmul.msk.bf16.vlgmr.msra.gmra.mxu2 %vm587_vm0, %v2350_v9  ;;  %2313 = vmatmul.msk.bf16.vlgmr.msra.gmra.mxu3 %vm587_vm0, %v2354_v43  ;;  %v2349_v52 = vld [vmem:[%s2805_s27 + $0x38] sm:$0xff]  ;;  %v3031_v56 = vld [vmem:[%s3552_s5] ss:$0 sm:$0xff]  ;;  %v1490_v5 = vld [vmem:[%s2809_s17 + $0x10] sm:$0xff]  ;;  %v1605_v20 = vadd.s32 128, %v3034_v57  ;;  %v1591_v21 = vadd.s32 16, %v3034_v57 }
 0x315   : > { %v2353_v53 = vld [vmem:[%s2805_s27 + $0x58] sm:$0xff]  ;;  %v1488_v26 = vld [vmem:[%s2809_s17] sm:$0xff]  ;;  %v1630_v7 = vadd.s32 %v3039_v59, %v1597_v63  ;;  %v1497_v41 = vld [vmem:[%s2809_s17 + $0x48] sm:$0xff]  ;;  %vm1654_vm1 = vcmp.lt.s32.totalorder %v1622_v1, 300  ;;  %v1525_v14 = vadd.f32 %v3031_v56, %v1489_v3  ;;  %v1623_v15 = vadd.s32 %v3039_v59, %v1590_v2 }
 0x316   : > { %v2357_v54 = vld [vmem:[%s2805_s27 + $0x78] sm:$0xff]  ;;  %v1496_v58 = vld [vmem:[%s2809_s17 + $0x40] sm:$0xff]  ;;  %v1524_v61 = vadd.f32 %v3031_v56, %v1488_v26  ;;  %v3063_v18 = vadd.f32 %v3031_v56, %v1490_v5  ;;  %v1533_v51 = vadd.f32 %v3031_v56, %v1497_v41  ;;  %v1631_v27 = vadd.s32 %v3039_v59, %v1598_v12  ;;  %v1498_v32 = vld [vmem:[%s2809_s17 + $0x50] sm:$0xff] }
 0x317   : > { %v3046_v62 = vld [vmem:[%s3553_s6] ss:$0 sm:$0xff]  ;;  %v1532_v0 = vadd.f32 %v3031_v56, %v1496_v58  ;;  %vm1662_vm2 = vcmp.lt.s32.totalorder %v1630_v7, 300  ;;  %v1557_v28 = vmax.f32 %v1525_v14, 0.0  ;;  %vm1655_vm3 = vcmp.lt.s32.totalorder %v1623_v15, 300  ;;  %v1491_v31 = vld [vmem:[%s2809_s17 + $0x18] sm:$0xff] }
 0x318   : > { %v1556_v36 = vmax.f32 %v1524_v61, 0.0  ;;  %v1504_v13 = vld [vmem:[%s2809_s17 + $0x80] sm:$0xff]  ;;  %v1558_v60 = vmax.f32 %v3063_v18, 0.0  ;;  %v1638_v34 = vadd.s32 %v3039_v59, %v1605_v20  ;;  %v3082_v37 = vadd.s32 %v3039_v59, %v1591_v21 }
 0x319   : > { %v1564_v11 = vmax.f32 %v1532_v0, 0.0  ;;  %v1540_v22 = vadd.f32 %v3031_v56, %v1504_v13  ;;  %v1565_v39 = vmax.f32 %v1533_v51, 0.0  ;;  %vm1663_vm4 = vcmp.lt.s32.totalorder %v1631_v27, 300  ;;  %v1506_v51 = vld [vmem:[%s2809_s17 + $0x90] sm:$0xff] }
 0x31a   : > { %vm1670_vm5 = vcmp.lt.s32.totalorder %v1638_v34, 300  ;;  %vm1656_vm6 = vcmp.lt.s32.totalorder %v3082_v37, 300  ;;  %v1600_v58 = vadd.s32 88, %v3034_v57  ;;  %v1593_v2 = vadd.s32 32, %v3034_v57  ;;  %v1493_v34 = vld [vmem:[%s2809_s17 + $0x28] sm:$0xff] }
 0x31b   : > { %v1572_v40 = vmax.f32 %v1540_v22, 0.0  ;;  %v1594_v37 = vadd.s32 40, %v3034_v57 }
 0x31c   : > { %v3129_v14 = vadd.s32 %v3039_v59, %v1600_v58  ;;  %v3137_v21 = vadd.s32 %v3039_v59, %v1593_v2 }
 0x31e   : > { %vm1665_vm10 = vcmp.lt.s32.totalorder %v3129_v14, 300  ;;  %vm1658_vm13 = vcmp.lt.s32.totalorder %v3137_v21, 300  ;;  %v1595_v14 = vadd.s32 48, %v3034_v57 }
 0x320   : > { %v3269_v21 = vadd.s32 %v3039_v59, %v1595_v14 }
 0x323   : > { %2302 = vmatmul.msk.bf16.gmra.mxu0 %vm587_vm0, %v2343_v44  ;;  %2306 = vmatmul.msk.bf16.gmra.mxu1 %vm587_vm0, %v2347_v45  ;;  %v1599_v44 = vadd.s32 80, %v3034_v57  ;;  %v1492_v45 = vld [vmem:[%s2809_s17 + $0x20] sm:$0xff] }
 0x324   : > { %2310 = vmatmul.msk.bf16.gmra.mxu2 %vm587_vm0, %v2351_v46  ;;  %2314 = vmatmul.msk.bf16.gmra.mxu3 %vm587_vm0, %v2355_v47  ;;  %v1505_v46 = vld [vmem:[%s2809_s17 + $0x88] sm:$0xff]  ;;  %v3101_v26 = vadd.f32 %v3031_v56, %v1492_v45 }
 0x325   : > { %v1541_v61 = vadd.f32 %v3031_v56, %v1505_v46  ;;  %v1632_v1 = vadd.s32 %v3039_v59, %v1599_v44  ;;  %v1613_v44 = vadd.s32 192, %v3034_v57  ;;  %v3163_v46 = vadd.f32 %v3031_v56, %v1493_v34 }
 0x326   : > { %v1560_v13 = vmax.f32 %v3101_v26, 0.0 }
 0x327   : > { %vm1664_vm7 = vcmp.lt.s32.totalorder %v1632_v1, 300  ;;  %v1646_v1 = vadd.s32 %v3039_v59, %v1613_v44 }
 0x329   : > { %vm1678_vm12 = vcmp.lt.s32.totalorder %v1646_v1, 300 }
 0x333   : > { %2303 = vmatmul.msk.bf16.gmra.mxu0 %vm587_vm0, %v2344_v19  ;;  %2307 = vmatmul.msk.bf16.gmra.mxu1 %vm587_vm0, %v2348_v23  ;;  %v3093_v19 = vadd.f32 %v3031_v56, %v1491_v31  ;;  %v1592_v23 = vadd.s32 24, %v3034_v57  ;;  %v1512_v31 = vld [vmem:[%s2809_s17 + $0xc0] sm:$0xff] }
 0x334   : > { %2311 = vmatmul.msk.bf16.gmra.mxu2 %vm587_vm0, %v2352_v48  ;;  %2315 = vmatmul.msk.bf16.gmra.mxu3 %vm587_vm0, %v2356_v49  ;;  %v1534_v48 = vadd.f32 %v3031_v56, %v1498_v32 }
 0x335   : > { %v1559_v3 = vmax.f32 %v3093_v19, 0.0 }
 0x343   : > { %2304 = vmatmul.msk.bf16.gmra.mxu0 %vm587_vm0, %v2345_v50  ;;  %2308 = vmatmul.msk.bf16.gmra.mxu1 %vm587_vm0, %v2349_v52 }
 0x344   : > { %2312 = vmatmul.msk.bf16.gmra.mxu2 %vm587_vm0, %v2353_v53  ;;  %2316 = vmatmul.msk.bf16.gmra.mxu3 %vm587_vm0, %v2357_v54  ;;  %v1499_v53 = vld [vmem:[%s2809_s17 + $0x58] sm:$0xff]  ;;  %v1606_v54 = vadd.s32 136, %v3034_v57 }
 0x390   : > { %v1376_v4 = vpop.f32.mrf.mxu0  ;;  %v1396_v6 = vpop.f32.mrf.mxu1 }
 0x391   : > { %v1377_v8 = vadd.f32 %v3046_v62, %v1376_v4  ;;  %v1397_v10 = vadd.f32 %v3046_v62, %v1396_v6  ;;  %v3109_v4 = vadd.s32 %v3039_v59, %v1592_v23  ;;  %v3114_v6 = vadd.f32 %v3031_v56, %v1499_v53 }
 0x392   : > { %v1601_v23 = vadd.s32 96, %v3034_v57 }
 0x393   : > { %v1456_v16 = vmax.f32 %v1377_v8, 0.0  ;;  %v1464_v17 = vmax.f32 %v1397_v10, 0.0  ;;  %v1566_v8 = vmax.f32 %v1534_v48, 0.0  ;;  %v1567_v27 = vmax.f32 %v3114_v6, 0.0 }
 0x394   : > { %vm1657_vm9 = vcmp.lt.s32.totalorder %v3109_v4, 300 }
 0x395   : > { %v1686_v24 = vadd.f32 %v1556_v36, %v1456_v16  ;;  %v1694_v25 = vadd.f32 %v1564_v11, %v1464_v17  ;;  %v1639_v11 = vadd.s32 %v3039_v59, %v1606_v54  ;;  %v1573_v16 = vmax.f32 %v1541_v61, 0.0 }
 0x397   : > { %v3071_v29 = vsel %vm1654_vm1, %v1686_v24, 0.0  ;;  %v3073_v30 = vsel %vm1662_vm2, %v1694_v25, 0.0  ;;  %v1416_v33 = vpop.f32.mrf.mxu2  ;;  %v1436_v47 = vpop.f32.mrf.mxu3  ;;  %vm1671_vm8 = vcmp.lt.s32.totalorder %v1639_v11, 300  ;;  %v3190_v11 = vadd.s32 %v3039_v59, %v1601_v23  ;;  %v1513_v23 = vld [vmem:[%s2809_s17 + $0xc8] sm:$0xff] }
 0x398   : > { %1814 = vst [vmem:[%s2809_s17] sm:$0xff] %v3071_v29  ;;  %v1378_v35 = vpop.f32.mrf.mxu0  ;;  %v1398_v38 = vpop.f32.mrf.mxu1  ;;  %v1417_v42 = vadd.f32 %v3046_v62, %v1416_v33  ;;  %v1883_v24 = vmul.f32 %v3071_v29, %v3071_v29  ;;  %v3146_v25 = vmul.f32 %v3073_v30, %v3073_v30 }
 0x399   : > { %v1379_v9 = vadd.f32 %v3046_v62, %v1378_v35  ;;  %1822 = vst [vmem:[%s2809_s17 + $0x40] sm:$0xff] %v3073_v30  ;;  %v1399_v43 = vadd.f32 %v3046_v62, %v1398_v38  ;;  %v1607_v35 = vadd.s32 144, %v3034_v57  ;;  %vm1666_vm14 = vcmp.lt.s32.totalorder %v3190_v11, 300  ;;  %v1502_v11 = vld [vmem:[%s2809_s17 + $0x70] sm:$0xff] }
 0x39a   : > { %v1472_v49 = vmax.f32 %v1417_v42, 0.0  ;;  %v1437_v42 = vadd.f32 %v3046_v62, %v1436_v47 }
 0x39b   : > { %v1457_v50 = vmax.f32 %v1379_v9, 0.0  ;;  %v1465_v52 = vmax.f32 %v1399_v43, 0.0  ;;  %v1548_v43 = vadd.f32 %v3031_v56, %v1512_v31 }
 0x39c   : > { %v1702_v55 = vadd.f32 %v1572_v40, %v1472_v49  ;;  %v1480_v48 = vmax.f32 %v1437_v42, 0.0  ;;  %v1608_v42 = vadd.s32 152, %v3034_v57 }
 0x39d   : > { %v1687_v63 = vadd.f32 %v1557_v28, %v1457_v50  ;;  %v1695_v0 = vadd.f32 %v1565_v39, %v1465_v52  ;;  %v1542_v39 = vadd.f32 %v3031_v56, %v1506_v51  ;;  %v1640_v50 = vadd.s32 %v3039_v59, %v1607_v35 }
 0x39e   : > { %v3111_v36 = vsel %vm1670_vm5, %v1702_v55, 0.0  ;;  %v1580_v52 = vmax.f32 %v1548_v43, 0.0 }
 0x39f   : > { %v3117_v7 = vsel %vm1655_vm3, %v1687_v63, 0.0  ;;  %v3120_v5 = vsel %vm1663_vm4, %v1695_v0, 0.0  ;;  %1830 = vst [vmem:[%s2809_s17 + $0x80] sm:$0xff] %v3111_v36  ;;  %v1418_v10 = vpop.f32.mrf.mxu2  ;;  %v3140_v22 = vpop.f32.mrf.mxu3  ;;  %v1574_v61 = vmax.f32 %v1542_v39, 0.0  ;;  %vm1672_vm11 = vcmp.lt.s32.totalorder %v1640_v50, 300 }
 0x3a0   : > { %1815 = vst [vmem:[%s2809_s17 + $0x8] sm:$0xff] %v3117_v7  ;;  %v1381_v41 = vpop.f32.mrf.mxu0  ;;  %v1401_v12 = vpop.f32.mrf.mxu1  ;;  %v1419_v15 = vadd.f32 %v3046_v62, %v1418_v10  ;;  %v1884_v53 = vmul.f32 %v3117_v7, %v3117_v7  ;;  %v1710_v2 = vadd.f32 %v1580_v52, %v1480_v48  ;;  %vm1660_vm3 = vcmp.lt.s32.totalorder %v3269_v21, 300 }
 0x3a1   : > { %v1382_v17 = vadd.f32 %v3046_v62, %v1381_v41  ;;  %1823 = vst [vmem:[%s2809_s17 + $0x48] sm:$0xff] %v3120_v5  ;;  %v1402_v20 = vadd.f32 %v3046_v62, %v1401_v12 }
 0x3a2   : > { %v1473_v28 = vmax.f32 %v1419_v15, 0.0  ;;  %v1915_v31 = vadd.f32 %v1884_v53, %v1883_v24  ;;  %v1602_v53 = vadd.s32 104, %v3034_v57 }
 0x3a3   : > { %v1458_v32 = vmax.f32 %v1382_v17, 0.0  ;;  %v1466_v33 = vmax.f32 %v1402_v20, 0.0  ;;  %v1846_v17 = vadd.f32 %v3117_v7, %v3071_v29  ;;  %v3197_v20 = vadd.s32 %v3039_v59, %v1594_v37  ;;  %v1494_v7 = vld [vmem:[%s2809_s17 + $0x30] sm:$0xff] }
 0x3a4   : > { %v1703_v38 = vadd.f32 %v1573_v16, %v1473_v28  ;;  %v1507_v16 = vld [vmem:[%s2809_s17 + $0x98] sm:$0xff]  ;;  %v3199_v28 = vsel %vm1678_vm12, %v1710_v2, 0.0  ;;  %v3231_v44 = vadd.f32 %v3031_v56, %v1494_v7 }
 0x3a5   : > { %v1688_v40 = vadd.f32 %v1558_v60, %v1458_v32  ;;  %v1696_v9 = vadd.f32 %v1566_v8, %v1466_v33  ;;  %v1500_v60 = vld [vmem:[%s2809_s17 + $0x60] sm:$0xff]  ;;  %v1561_v8 = vmax.f32 %v3163_v46, 0.0  ;;  %v3203_v32 = vmul.f32 %v3120_v5, %v3120_v5  ;;  %1838 = vst [vmem:[%s2809_s17 + $0xc0] sm:$0xff] %v3199_v28 }
 0x3a6   : > { %v3160_v45 = vsel %vm1671_vm8, %v1703_v38, 0.0  ;;  %v1536_v10 = vadd.f32 %v3031_v56, %v1500_v60  ;;  %v1543_v24 = vadd.f32 %v3031_v56, %v1507_v16  ;;  %vm1659_vm15 = vcmp.lt.s32.totalorder %v3197_v20, 300 }
 0x3a7   : > { %v1784_v47 = vsel %vm1656_vm6, %v1688_v40, 0.0  ;;  %v3169_v18 = vsel %vm1664_vm7, %v1696_v9, 0.0  ;;  %1831 = vst [vmem:[%s2809_s17 + $0x88] sm:$0xff] %v3160_v45  ;;  %v1421_v49 = vpop.f32.mrf.mxu2  ;;  %v3185_v6 = vpop.f32.mrf.mxu3 }
 0x3a8   : > { %1816 = vst [vmem:[%s2809_s17 + $0x10] sm:$0xff] %v1784_v47  ;;  %v1383_v54 = vpop.f32.mrf.mxu0  ;;  %v1403_v55 = vpop.f32.mrf.mxu1  ;;  %v1422_v58 = vadd.f32 %v3046_v62, %v1421_v49  ;;  %v1568_v34 = vmax.f32 %v1536_v10, 0.0  ;;  %v1847_v38 = vadd.f32 %v1846_v17, %v1784_v47  ;;  %v1885_v40 = vmul.f32 %v1784_v47, %v1784_v47 }
 0x3a9   : > { %v1384_v63 = vadd.f32 %v3046_v62, %v1383_v54  ;;  %1824 = vst [vmem:[%s2809_s17 + $0x50] sm:$0xff] %v3169_v18  ;;  %v1404_v0 = vadd.f32 %v3046_v62, %v1403_v55  ;;  %v3228_v9 = vmul.f32 %v3169_v18, %v3169_v18  ;;  %v1575_v49 = vmax.f32 %v1543_v24, 0.0 }
 0x3aa   : > { %v1474_v41 = vmax.f32 %v1422_v58, 0.0  ;;  %v1641_v54 = vadd.s32 %v3039_v59, %v1608_v42  ;;  %v1439_v55 = vadd.f32 %v3046_v62, %v3140_v22  ;;  %v1614_v10 = vadd.s32 200, %v3034_v57 }
 0x3ab   : > { %v1459_v12 = vmax.f32 %v1384_v63, 0.0  ;;  %v1467_v15 = vmax.f32 %v1404_v0, 0.0  ;;  %v1549_v63 = vadd.f32 %v3031_v56, %v1513_v23  ;;  %v1495_v0 = vld [vmem:[%s2809_s17 + $0x38] sm:$0xff]  ;;  %v1916_v16 = vadd.f32 %v1915_v31, %v1885_v40 }
 0x3ac   : > { %v1704_v51 = vadd.f32 %v1574_v61, %v1474_v41  ;;  %vm1673_vm0 = vcmp.lt.s32.totalorder %v1641_v54, 300  ;;  %v1481_v2 = vmax.f32 %v1439_v55, 0.0  ;;  %v1635_v17 = vadd.s32 %v3039_v59, %v1602_v53 }
 0x3ad   : > { %v1689_v33 = vadd.f32 %v1559_v3, %v1459_v12  ;;  %v1697_v29 = vadd.f32 %v1567_v27, %v1467_v15  ;;  %v1501_v27 = vld [vmem:[%s2809_s17 + $0x68] sm:$0xff]  ;;  %v1581_v22 = vmax.f32 %v1549_v63, 0.0  ;;  %v1603_v23 = vadd.s32 112, %v3034_v57 }
 0x3ae   : > { %v3212_v35 = vsel %vm1672_vm11, %v1704_v51, 0.0  ;;  %v1537_v52 = vadd.f32 %v3031_v56, %v1501_v27  ;;  %v1647_v51 = vadd.s32 %v3039_v59, %v1614_v10  ;;  %v1562_v27 = vmax.f32 %v3231_v44, 0.0 }
 0x3af   : > { %v1785_v19 = vsel %vm1657_vm9, %v1689_v33, 0.0  ;;  %v3219_v3 = vsel %vm1665_vm10, %v1697_v29, 0.0  ;;  %1832 = vst [vmem:[%s2809_s17 + $0x90] sm:$0xff] %v3212_v35  ;;  %v1423_v39 = vpop.f32.mrf.mxu2  ;;  %v3240_v50 = vpop.f32.mrf.mxu3  ;;  %v3256_v33 = vadd.f32 %v3031_v56, %v1495_v0  ;;  %v1711_v31 = vadd.f32 %v1581_v22, %v1481_v2 }
 0x3b0   : > { %1817 = vst [vmem:[%s2809_s17 + $0x18] sm:$0xff] %v1785_v19  ;;  %v1386_v43 = vpop.f32.mrf.mxu0  ;;  %v1406_v4 = vpop.f32.mrf.mxu1  ;;  %v1424_v60 = vadd.f32 %v3046_v62, %v1423_v39  ;;  %v1886_v1 = vmul.f32 %v1785_v19, %v1785_v19  ;;  %v1569_v42 = vmax.f32 %v1537_v52, 0.0  ;;  %vm1679_vm1 = vcmp.lt.s32.totalorder %v1647_v51, 300 }
 0x3b1   : > { %v1387_v48 = vadd.f32 %v3046_v62, %v1386_v43  ;;  %1825 = vst [vmem:[%s2809_s17 + $0x58] sm:$0xff] %v3219_v3  ;;  %v1407_v47 = vadd.f32 %v3046_v62, %v1406_v4  ;;  %vm1667_vm2 = vcmp.lt.s32.totalorder %v1635_v17, 300  ;;  %v1563_v14 = vmax.f32 %v3256_v33, 0.0 }
 0x3b2   : > { %v1475_v61 = vmax.f32 %v1424_v60, 0.0  ;;  %v1917_v40 = vadd.f32 %v1916_v16, %v1886_v1  ;;  %v1538_v52 = vadd.f32 %v3031_v56, %v1502_v11  ;;  %v1442_v0 = vadd.f32 %v3046_v62, %v3185_v6 }
 0x3b3   : > { %v1460_v37 = vmax.f32 %v1387_v48, 0.0  ;;  %v1468_v58 = vmax.f32 %v1407_v47, 0.0  ;;  %v1514_v48 = vld [vmem:[%s2809_s17 + $0xd0] sm:$0xff]  ;;  %v1636_v2 = vadd.s32 %v3039_v59, %v1603_v23 }
 0x3b4   : > { %v1705_v15 = vadd.f32 %v1575_v49, %v1475_v61  ;;  %v1596_v49 = vadd.s32 56, %v3034_v57  ;;  %v1550_v1 = vadd.f32 %v3031_v56, %v1514_v48  ;;  %v1482_v46 = vmax.f32 %v1442_v0, 0.0 }
 0x3b5   : > { %v1690_v41 = vadd.f32 %v1560_v13, %v1460_v37  ;;  %v1698_v12 = vadd.f32 %v1568_v34, %v1468_v58  ;;  %v1848_v34 = vadd.f32 %v1847_v38, %v1785_v19  ;;  %v1508_v38 = vld [vmem:[%s2809_s17 + $0xa0] sm:$0xff]  ;;  %v3279_v19 = vsel %vm1679_vm1, %v1711_v31, 0.0 }
 0x3b6   : > { %v3264_v13 = vsel %vm1673_vm0, %v1705_v15, 0.0  ;;  %1839 = vst [vmem:[%s2809_s17 + $0xc8] sm:$0xff] %v3279_v19  ;;  %v1544_v37 = vadd.f32 %v3031_v56, %v1508_v38  ;;  %v1609_v58 = vadd.s32 160, %v3034_v57  ;;  %v3308_v31 = vadd.s32 %v3039_v59, %v1596_v49 }
 0x3b7   : > { %v1786_v29 = vsel %vm1658_vm13, %v1690_v41, 0.0  ;;  %v3262_v26 = vsel %vm1666_vm14, %v1698_v12, 0.0  ;;  %v1426_v7 = vpop.f32.mrf.mxu2  ;;  %1833 = vst [vmem:[%s2809_s17 + $0x98] sm:$0xff] %v3264_v13  ;;  %v3288_v53 = vpop.f32.mrf.mxu3  ;;  %vm1668_vm5 = vcmp.lt.s32.totalorder %v1636_v2, 300  ;;  %v1610_v0 = vadd.s32 168, %v3034_v57 }
 0x3b8   : > { %1818 = vst [vmem:[%s2809_s17 + $0x20] sm:$0xff] %v1786_v29  ;;  %v1388_v24 = vpop.f32.mrf.mxu0  ;;  %v1408_v39 = vpop.f32.mrf.mxu1  ;;  %v1887_v54 = vmul.f32 %v1786_v29, %v1786_v29  ;;  %v1427_v55 = vadd.f32 %v3046_v62, %v1426_v7  ;;  %v1576_v41 = vmax.f32 %v1544_v37, 0.0  ;;  %v1642_v12 = vadd.s32 %v3039_v59, %v1609_v58 }
 0x3b9   : > { %v1389_v43 = vadd.f32 %v3046_v62, %v1388_v24  ;;  %1826 = vst [vmem:[%s2809_s17 + $0x60] sm:$0xff] %v3262_v26  ;;  %v1409_v4 = vadd.f32 %v3046_v62, %v1408_v39  ;;  %v1849_v6 = vadd.f32 %v1848_v34, %v1786_v29  ;;  %v1570_v24 = vmax.f32 %v1538_v52, 0.0  ;;  %v1503_v29 = vld [vmem:[%s2809_s17 + $0x78] sm:$0xff] }
 0x3ba   : > { %v1476_v10 = vmax.f32 %v1427_v55, 0.0  ;;  %vm1674_vm4 = vcmp.lt.s32.totalorder %v1642_v12, 300  ;;  %v1918_v34 = vadd.f32 %v1917_v40, %v1887_v54  ;;  %v1539_v49 = vadd.f32 %v3031_v56, %v1503_v29 }
 0x3bb   : > { %v1461_v47 = vmax.f32 %v1389_v43, 0.0  ;;  %v1469_v60 = vmax.f32 %v1409_v4, 0.0  ;;  %v1604_v43 = vadd.s32 120, %v3034_v57  ;;  %v1509_v4 = vld [vmem:[%s2809_s17 + $0xa8] sm:$0xff]  ;;  %vm1661_vm7 = vcmp.lt.s32.totalorder %v3308_v31, 300 }
 0x3bc   : > { %v1706_v39 = vadd.f32 %v1576_v41, %v1476_v10  ;;  %v1545_v37 = vadd.f32 %v3031_v56, %v1509_v4  ;;  %v1515_v41 = vld [vmem:[%s2809_s17 + $0xd8] sm:$0xff]  ;;  %v1894_v31 = vmul.f32 %v3219_v3, %v3219_v3  ;;  %vm1952_vm1 = vcmask 1040384  }
 0x3bd   : > { %v1691_v61 = vadd.f32 %v1561_v8, %v1461_v47  ;;  %v1699_v63 = vadd.f32 %v1569_v42, %v1469_v60  ;;  %v1582_v8 = vmax.f32 %v1550_v1, 0.0  ;;  %v1615_v42 = vadd.s32 208, %v3034_v57 }
 0x3be   : > { %v3318_v48 = vsel %vm1674_vm4, %v1706_v39, 0.0  ;;  %v1637_v52 = vadd.s32 %v3039_v59, %v1604_v43  ;;  %v1577_v10 = vmax.f32 %v1545_v37, 0.0  ;;  %v1510_v39 = vld [vmem:[%s2809_s17 + $0xb0] sm:$0xff] }
 0x3bf   : > { %v1787_v15 = vsel %vm1659_vm15, %v1691_v61, 0.0  ;;  %v3304_v22 = vsel %vm1667_vm2, %v1699_v63, 0.0  ;;  %v1428_v16 = vpop.f32.mrf.mxu2  ;;  %v1712_v11 = vadd.f32 %v1582_v8, %v1482_v46  ;;  %v1648_v47 = vadd.s32 %v3039_v59, %v1615_v42  ;;  %1834 = vst [vmem:[%s2809_s17 + $0xa0] sm:$0xff] %v3318_v48  ;;  %v3329_v58 = vpop.f32.mrf.mxu3 }
 0x3c0   : > { %1819 = vst [vmem:[%s2809_s17 + $0x28] sm:$0xff] %v1787_v15  ;;  %v1391_v51 = vpop.f32.mrf.mxu0  ;;  %v1411_v7 = vpop.f32.mrf.mxu1  ;;  %v1888_v60 = vmul.f32 %v1787_v15, %v1787_v15  ;;  %v1429_v40 = vadd.f32 %v3046_v62, %v1428_v16  ;;  %v1850_v1 = vadd.f32 %v1849_v6, %v1787_v15  ;;  %vm1669_vm8 = vcmp.lt.s32.totalorder %v1637_v52, 300 }
 0x3c1   : > { %v1392_v20 = vadd.f32 %v3046_v62, %v1391_v51  ;;  %1827 = vst [vmem:[%s2809_s17 + $0x68] sm:$0xff] %v3304_v22  ;;  %v1412_v17 = vadd.f32 %v3046_v62, %v1411_v7  ;;  %vm1680_vm6 = vcmp.lt.s32.totalorder %v1648_v47, 300  ;;  %v1571_v51 = vmax.f32 %v1539_v49, 0.0 }
 0x3c2   : > { %v3332_v61 = vsel %vm1680_vm6, %v1712_v11, 0.0  ;;  %v1477_v63 = vmax.f32 %v1429_v40, 0.0  ;;  %v1919_v46 = vadd.f32 %v1918_v34, %v1888_v60  ;;  %v1643_v15 = vadd.s32 %v3039_v59, %v1610_v0  ;;  %v1516_v0 = vld [vmem:[%s2809_s17 + $0xe0] sm:$0xff] }
 0x3c3   : > { %v1462_v38 = vmax.f32 %v1392_v20, 0.0  ;;  %v1470_v23 = vmax.f32 %v1412_v17, 0.0  ;;  %1840 = vst [vmem:[%s2809_s17 + $0xd0] sm:$0xff] %v3332_v61  ;;  %v1444_v7 = vadd.f32 %v3046_v62, %v3240_v50  ;;  %v1551_v20 = vadd.f32 %v3031_v56, %v1515_v41 }
 0x3c4   : > { %v1707_v6 = vadd.f32 %v1577_v10, %v1477_v63  ;;  %vm1675_vm9 = vcmp.lt.s32.totalorder %v1643_v15, 300  ;;  %v1616_v17 = vadd.s32 216, %v3034_v57  ;;  %v1546_v60 = vadd.f32 %v3031_v56, %v1510_v39 }
 0x3c5   : > { %v1692_v54 = vadd.f32 %v1562_v27, %v1462_v38  ;;  %v1700_v55 = vadd.f32 %v1570_v24, %v1470_v23  ;;  %v1483_v11 = vmax.f32 %v1444_v7, 0.0  ;;  %v1583_v4 = vmax.f32 %v1551_v20, 0.0 }
 0x3c6   : > { %v3354_v34 = vsel %vm1675_vm9, %v1707_v6, 0.0  ;;  %v1649_v38 = vadd.s32 %v3039_v59, %v1616_v17  ;;  %v1611_v49 = vadd.s32 176, %v3034_v57  ;;  %v1552_v15 = vadd.f32 %v3031_v56, %v1516_v0 }
 0x3c7   : > { %v1788_v44 = vsel %vm1660_vm3, %v1692_v54, 0.0  ;;  %v3338_v27 = vsel %vm1668_vm5, %v1700_v55, 0.0  ;;  %v1431_v12 = vpop.f32.mrf.mxu2  ;;  %1835 = vst [vmem:[%s2809_s17 + $0xa8] sm:$0xff] %v3354_v34  ;;  %v1713_v40 = vadd.f32 %v1583_v4, %v1483_v11  ;;  %v1447_v55 = vadd.f32 %v3046_v62, %v3288_v53  ;;  %v1511_v53 = vld [vmem:[%s2809_s17 + $0xb8] sm:$0xff] }
 0x3c8   : > { %1820 = vst [vmem:[%s2809_s17 + $0x30] sm:$0xff] %v1788_v44  ;;  %v1393_v8 = vpop.f32.mrf.mxu0  ;;  %v1413_v16 = vpop.f32.mrf.mxu1  ;;  %v1851_v24 = vadd.f32 %v1850_v1, %v1788_v44  ;;  %v1889_v43 = vmul.f32 %v1788_v44, %v1788_v44  ;;  %v1432_v50 = vadd.f32 %v3046_v62, %v1431_v12  ;;  %vm1681_vm10 = vcmp.lt.s32.totalorder %v1649_v38, 300 }
 0x3c9   : > { %v1394_v21 = vadd.f32 %v3046_v62, %v1393_v8  ;;  %1828 = vst [vmem:[%s2809_s17 + $0x70] sm:$0xff] %v3338_v27  ;;  %v1414_v2 = vadd.f32 %v3046_v62, %v1413_v16  ;;  %v1644_v63 = vadd.s32 %v3039_v59, %v1611_v49  ;;  %v1451_v1 = vpop.f32.mrf.mxu3  ;;  %v3374_v12 = vsel %vm1681_vm10, %v1713_v40, 0.0 }
 0x3ca   : > { %v1478_v54 = vmax.f32 %v1432_v50, 0.0  ;;  %v1920_v44 = vadd.f32 %v1919_v46, %v1889_v43  ;;  %v1484_v16 = vmax.f32 %v1447_v55, 0.0  ;;  %1841 = vst [vmem:[%s2809_s17 + $0xd8] sm:$0xff] %v3374_v12  ;;  %v1547_v7 = vadd.f32 %v3031_v56, %v1511_v53 }
 0x3cb   : > { %v1463_v42 = vmax.f32 %v1394_v21, 0.0  ;;  %v1471_v29 = vmax.f32 %v1414_v2, 0.0  ;;  %vm1676_vm11 = vcmp.lt.s32.totalorder %v1644_v63, 300  ;;  %v1617_v21 = vadd.s32 224, %v3034_v57 }
 0x3cc   : > { %v1895_v20 = vmul.f32 %v3262_v26, %v3262_v26  ;;  %v1584_v39 = vmax.f32 %v1552_v15, 0.0  ;;  %v1579_v43 = vmax.f32 %v1547_v7, 0.0  ;;  %v1452_v0 = vadd.f32 %v3046_v62, %v1451_v1 }
 0x3cd   : > { %v1693_v23 = vadd.f32 %v1563_v14, %v1463_v42  ;;  %v1701_v47 = vadd.f32 %v1571_v51, %v1471_v29  ;;  %v1578_v14 = vmax.f32 %v1546_v60, 0.0  ;;  %v1517_v42 = vld [vmem:[%s2809_s17 + $0xe8] sm:$0xff]  ;;  %v1650_v29 = vadd.s32 %v3039_v59, %v1617_v21 }
 0x3ce   : > { %v1619_v53 = vadd.s32 240, %v3034_v57 }
 0x3cf   : > { %v1789_v37 = vsel %vm1661_vm7, %v1693_v23, 0.0  ;;  %v3369_v33 = vsel %vm1669_vm8, %v1701_v47, 0.0  ;;  %v1433_v8 = vpop.f32.mrf.mxu2  ;;  %v1708_v52 = vadd.f32 %v1578_v14, %v1478_v54  ;;  %v1714_v23 = vadd.f32 %v1584_v39, %v1484_v16  ;;  %v1518_v54 = vld [vmem:[%s2809_s17 + $0xf0] sm:$0xff] }
 0x3d0   : > { %1821 = vst [vmem:[%s2809_s17 + $0x38] sm:$0xff] %v1789_v37  ;;  %v1852_v10 = vadd.f32 %v1851_v24, %v1789_v37  ;;  %v1890_v41 = vmul.f32 %v1789_v37, %v1789_v37  ;;  %v1434_v6 = vadd.f32 %v3046_v62, %v1433_v8  ;;  %v1612_v24 = vadd.s32 184, %v3034_v57 }
 0x3d1   : > { %1829 = vst [vmem:[%s2809_s17 + $0x78] sm:$0xff] %v3369_v33  ;;  %v3386_v2 = vsel %vm1676_vm11, %v1708_v52, 0.0  ;;  %vm1682_vm12 = vcmp.lt.s32.totalorder %v1650_v29, 300  ;;  %v1553_v47 = vadd.f32 %v3031_v56, %v1517_v42  ;;  %v1618_v37 = vadd.s32 232, %v3034_v57  ;;  %v1453_v14 = vpop.f32.mrf.mxu3 }
 0x3d2   : > { %v1853_v51 = vadd.f32 %v1852_v10, %v3073_v30  ;;  %v1921_v46 = vadd.f32 %v1920_v44, %v1890_v41  ;;  %1836 = vst [vmem:[%s2809_s17 + $0xb0] sm:$0xff] %v3386_v2  ;;  %v1479_v11 = vmax.f32 %v1434_v6, 0.0  ;;  %v1645_v4 = vadd.s32 %v3039_v59, %v1612_v24  ;;  %v1519_v44 = vld [vmem:[%s2809_s17 + $0xf8] sm:$0xff] }
 0x3d3   : > { %v3407_v40 = vsel %vm1682_vm12, %v1714_v23, 0.0  ;;  %v1585_v55 = vmax.f32 %v1553_v47, 0.0  ;;  %v1651_v10 = vadd.s32 %v3039_v59, %v1618_v37  ;;  %v1554_v8 = vadd.f32 %v3031_v56, %v1518_v54 }
 0x3d4   : > { %v1854_v30 = vadd.f32 %v1853_v51, %v3120_v5  ;;  %v1922_v17 = vadd.f32 %v1921_v46, %v3146_v25  ;;  %v1449_v5 = vadd.f32 %v3046_v62, %v3329_v58  ;;  %vm1677_vm13 = vcmp.lt.s32.totalorder %v1645_v4, 300  ;;  %1842 = vst [vmem:[%s2809_s17 + $0xe0] sm:$0xff] %v3407_v40 }
 0x3d5   : > { %v1709_v25 = vadd.f32 %v1579_v43, %v1479_v11  ;;  %v1486_v16 = vmax.f32 %v1452_v0, 0.0  ;;  %v1454_v51 = vadd.f32 %v3046_v62, %v1453_v14  ;;  %vm1683_vm14 = vcmp.lt.s32.totalorder %v1651_v10, 300 }
 0x3d6   : > { %v1855_v38 = vadd.f32 %v1854_v30, %v3169_v18  ;;  %v1923_v50 = vadd.f32 %v1922_v17, %v3203_v32  ;;  %v1485_v18 = vmax.f32 %v1449_v5, 0.0  ;;  %v1896_v32 = vmul.f32 %v3304_v22, %v3304_v22 }
 0x3d7   : > { %v3414_v58 = vsel %vm1677_vm13, %v1709_v25, 0.0  ;;  %v1652_v46 = vadd.s32 %v3039_v59, %v1619_v53  ;;  %v1555_v1 = vadd.f32 %v3031_v56, %v1519_v44  ;;  %v1487_v7 = vmax.f32 %v1454_v51, 0.0 }
 0x3d8   : > { %v1924_v60 = vadd.f32 %v1923_v50, %v3228_v9  ;;  %v1856_v49 = vadd.f32 %v1855_v38, %v3219_v3  ;;  %v1897_v3 = vmul.f32 %v3338_v27, %v3338_v27  ;;  %1837 = vst [vmem:[%s2809_s17 + $0xb8] sm:$0xff] %v3414_v58  ;;  %v1715_v41 = vadd.f32 %v1585_v55, %v1485_v18 }
 0x3d9   : > { %vm1684_vm15 = vcmp.lt.s32.totalorder %v1652_v46, 300  ;;  %v1898_v62 = vmul.f32 %v3369_v33, %v3369_v33  ;;  %v1620_v17 = vadd.s32 248, %v3034_v57  ;;  %v1900_v43 = vmul.f32 %v3160_v45, %v3160_v45 }
 0x3da   : > { %v1857_v9 = vadd.f32 %v1856_v49, %v3262_v26  ;;  %v1925_v63 = vadd.f32 %v1924_v60, %v1894_v31  ;;  %v1586_v31 = vmax.f32 %v1554_v8, 0.0  ;;  %v1811_v6 = vsel %vm1683_vm14, %v1715_v41, 0.0 }
 0x3db   : > { %1843 = vst [vmem:[%s2809_s17 + $0xe8] sm:$0xff] %v1811_v6  ;;  %v1653_v11 = vadd.s32 %v3039_v59, %v1620_v17  ;;  %v1901_v38 = vmul.f32 %v3212_v35, %v3212_v35  ;;  %v1903_v25 = vmul.f32 %v3318_v48, %v3318_v48  ;;  %v1904_v49 = vmul.f32 %v3354_v34, %v3354_v34 }
 0x3dc   : > { %v1858_v52 = vadd.f32 %v1857_v9, %v3304_v22  ;;  %v1926_v26 = vadd.f32 %v1925_v63, %v1895_v20  ;;  %v1716_v24 = vadd.f32 %v1586_v31, %v1486_v16  ;;  %v1587_v22 = vmax.f32 %v1555_v1, 0.0 }
 0x3dd   : > { %vm1685_vm0 = vcmp.lt.s32.totalorder %v1653_v11, 300  ;;  %v1906_v37 = vmul.f32 %v3414_v58, %v3414_v58 }
 0x3de   : > { %v1859_v15 = vadd.f32 %v1858_v52, %v3338_v27  ;;  %v1927_v21 = vadd.f32 %v1926_v26, %v1896_v32  ;;  %v1812_v56 = vsel %vm1684_vm15, %v1716_v24, 0.0  ;;  %v1717_v39 = vadd.f32 %v1587_v22, %v1487_v7 }
 0x3df   : > { %v1899_v27 = vmul.f32 %v3111_v36, %v3111_v36  ;;  %1844 = vst [vmem:[%s2809_s17 + $0xf0] sm:$0xff] %v1812_v56  ;;  %v1905_v32 = vmul.f32 %v3386_v2, %v3386_v2  ;;  %v1912_v52 = vmul.f32 %v1811_v6, %v1811_v6  ;;  %v1913_v31 = vmul.f32 %v1812_v56, %v1812_v56 }
 0x3e0   : > { %v1928_v20 = vadd.f32 %v1927_v21, %v1897_v3  ;;  %v1860_v30 = vadd.f32 %v1859_v15, %v3369_v33  ;;  %v1813_v57 = vsel %vm1685_vm0, %v1717_v39, 0.0 }
 0x3e1   : > { %1845 = vst [vmem:[%s2809_s17 + $0xf8] sm:$0xff] %v1813_v57  ;;  %v1914_v1 = vmul.f32 %v1813_v57, %v1813_v57 }
 0x3e2   : > { %v1861_v42 = vadd.f32 %v1860_v30, %v3111_v36  ;;  %v1929_v29 = vadd.f32 %v1928_v20, %v1898_v62  ;;  %v1902_v36 = vmul.f32 %v3264_v13, %v3264_v13 }
 0x3e4   : > { %v1862_v4 = vadd.f32 %v1861_v42, %v3160_v45  ;;  %v1930_v33 = vadd.f32 %v1929_v29, %v1899_v27 }
 0x3e6   : > { %v1931_v50 = vadd.f32 %v1930_v33, %v1900_v43  ;;  %v1863_v23 = vadd.f32 %v1862_v4, %v3212_v35 }
 0x3e8   : > { %v1864_v59 = vadd.f32 %v1863_v23, %v3264_v13  ;;  %v1932_v5 = vadd.f32 %v1931_v50, %v1901_v38 }
 0x3ea   : > { %v1865_v45 = vadd.f32 %v1864_v59, %v3318_v48  ;;  %v1933_v47 = vadd.f32 %v1932_v5, %v1902_v36  ;;  %v1907_v48 = vmul.f32 %v3199_v28, %v3199_v28 }
 0x3ec   : > { %v1866_v60 = vadd.f32 %v1865_v45, %v3354_v34  ;;  %v1934_v18 = vadd.f32 %v1933_v47, %v1903_v25  ;;  %v1908_v34 = vmul.f32 %v3279_v19, %v3279_v19 }
 0x3ee   : > { %v1935_v35 = vadd.f32 %v1934_v18, %v1904_v49  ;;  %v1867_v54 = vadd.f32 %v1866_v60, %v3386_v2  ;;  %v1909_v2 = vmul.f32 %v3332_v61, %v3332_v61 }
 0x3f0   : > { %v1936_v13 = vadd.f32 %v1935_v35, %v1905_v32  ;;  %v1868_v55 = vadd.f32 %v1867_v54, %v3414_v58  ;;  %v1910_v58 = vmul.f32 %v3374_v12, %v3374_v12 }
 0x3f2   : > { %v1869_v14 = vadd.f32 %v1868_v55, %v3199_v28  ;;  %v1937_v9 = vadd.f32 %v1936_v13, %v1906_v37  ;;  %v1911_v28 = vmul.f32 %v3407_v40, %v3407_v40 }
 0x3f4   : > { %v1870_v3 = vadd.f32 %v1869_v14, %v3279_v19  ;;  %v1938_v63 = vadd.f32 %v1937_v9, %v1907_v48 }
 0x3f6   : > { %v1939_v0 = vadd.f32 %v1938_v63, %v1908_v34  ;;  %v1871_v44 = vadd.f32 %v1870_v3, %v3332_v61 }
 0x3f8   : > { %v1872_v10 = vadd.f32 %v1871_v44, %v3374_v12  ;;  %v1940_v41 = vadd.f32 %v1939_v0, %v1909_v2 }
 0x3fa   : > { %v1873_v8 = vadd.f32 %v1872_v10, %v3407_v40  ;;  %v1941_v53 = vadd.f32 %v1940_v41, %v1910_v58 }
 0x3fc   : > { %v1874_v19 = vadd.f32 %v1873_v8, %v1811_v6  ;;  %v1942_v26 = vadd.f32 %v1941_v53, %v1911_v28 }
 0x3fe   : > { %v1943_v16 = vadd.f32 %v1942_v26, %v1912_v52  ;;  %v1875_v51 = vadd.f32 %v1874_v19, %v1812_v56 }
 0x400   : > { %v1944_v46 = vadd.f32 %v1943_v16, %v1913_v31  ;;  %v1876_v61 = vadd.f32 %v1875_v51, %v1813_v57 }
 0x402   : > { %v1877_v15 = vrot.slane %v1876_v61, 4  ;;  %v1945_v21 = vadd.f32 %v1944_v46, %v1914_v1 }
 0x404   : > { %v1878_v12 = vadd.f32 %v1877_v15, %v1876_v61  ;;  %v1946_v7 = vrot.slane %v1945_v21, 4 }
 0x406   : > { %v1879_v24 = vrot.slane %v1878_v12, 2  ;;  %v1947_v22 = vadd.f32 %v1946_v7, %v1945_v21 }
 0x408   : > { %v1880_v20 = vadd.f32 %v1879_v24, %v1878_v12  ;;  %v1948_v30 = vrot.slane %v1947_v22, 2 }
 0x40a   : > { %v1881_v40 = vrot.slane %v1880_v20, 1  ;;  %v1949_v62 = vadd.f32 %v1948_v30, %v1947_v22 }
 0x40c   : > { %v1950_v17 = vrot.slane %v1949_v62, 1  ;;  %v1882_v6 = vadd.f32 %v1881_v40, %v1880_v20 }
 0x40e   : > { %v1951_v39 = vadd.f32 %v1950_v17, %v1949_v62 }
 0x410   : > { %v1953_v27 = vsel %vm1952_vm1, %v1882_v6, %v1951_v39 }
 0x411   : > { %1954 = vst [vmem:[%s2811_s22] sm:$0x3] %v1953_v27 }
 0x412 PF: > { %s3578_s24 = sshll.u32 %s2607_s11, 8  ;;  %s1973_s30 = sshll.u32 %s2809_s17, 4  ;;  %s1974_s30 = int_to_ptr.vmem [resolvable:$true] %s1973_s30 }
 0x413   : > { %s1972_s21 = scalar_lea.hbm %s3554_s7, %s3578_s24  ;;  %s1956_s0 = scalar_lea.sflag [#allocation4], %s2790_s18 }
 0x414   : > { %s1975_s27 = sshll.u32 %s1972_s21, 4  ;;  %s2497_s15 = scalar_lea.hbm %s3554_s7, 512  ;;  %s1976_s27 = int_to_ptr.hbm [resolvable:$true] %s1975_s27 }
 0x415   : > { %s2491_s12 = sshra.s32 %s1976_s27, 4  ;;  %s2492_s12 = int_to_ptr.hbm [resolvable:$true] %s2491_s12 }
 0x416   : > { %s2493_s9 = scalar_lea.hbm %s2492_s12, 256  ;;  %p2498_p11 = scmp.lt.s32.totalorder %s2492_s12, %s3554_s7 }
 0x417   : > { %p2494_p8 = scmp.ne.s32.totalorder %s2492_s12, %s2493_s9  ;;  %p2499_p13 = scmp.lt.s32.totalorder %s2497_s15, %s2493_s9 }
 0x419   : > { %p2495_p9 = pnand %p2494_p8, %p2741_p7  ;;  %p2500_p0 = por %p2499_p13, %p2498_p11 }
 0x41b   : > { %p2496_p10 = pneg %p2495_p9 }
 0x41d   : > { %p2501_p1 = pnand %p2500_p0, %p2496_p10 }
 0x41f   : > { %2504 = shalt.err (!%p2501_p1)
}
 0x420   : > { %s2622_s17 = smov 128   ;;  %s2623_s20 = smov 8  }
 0x421   : > { %2380 = dma.vmem_to_hbm [thread:$0]  (%p2741_p7), %s1974_s30, 4096, %s1976_s27, %s1956_s0, %s2622_s17, %s2622_s17, %s2623_s20  }
 0x422   : > { %s2321_s24 = sshll.u32 %s2607_s11, 1  ;;  %s1990_s13 = sshll.u32 %s2811_s22, 4  ;;  %s1991_s13 = int_to_ptr.vmem [resolvable:$true] %s1990_s13 }
 0x423   : > { %s1988_s21 = scalar_lea.hbm %s3555_s8, %s2321_s24  ;;  %s1961_s9 = scalar_lea.sflag [#allocation6], %s2790_s18 }
 0x424   : > { %s1992_s12 = sshll.u32 %s1988_s21, 4  ;;  %s2525_s11 = scalar_lea.hbm %s3555_s8, 4  ;;  %s1993_s12 = int_to_ptr.hbm [resolvable:$true] %s1992_s12 }
 0x425   : > { %s2519_s10 = sshra.s32 %s1993_s12, 4  ;;  %s2520_s10 = int_to_ptr.hbm [resolvable:$true] %s2519_s10 }
 0x426   : > { %s2521_s15 = scalar_lea.hbm %s2520_s10, 2  ;;  %p2526_p5 = scmp.lt.s32.totalorder %s2520_s10, %s3555_s8 }
 0x427   : > { %p2522_p2 = scmp.ne.s32.totalorder %s2520_s10, %s2521_s15  ;;  %p2527_p6 = scmp.lt.s32.totalorder %s2525_s11, %s2521_s15 }
 0x429   : > { %p2523_p3 = pnand %p2522_p2, %p2741_p7  ;;  %p2528_p8 = por %p2527_p6, %p2526_p5 }
 0x42b   : > { %p2524_p4 = pneg %p2523_p3 }
 0x42d   : > { %p2529_p9 = pnand %p2528_p8, %p2524_p4 }
 0x42f   : > { %2532 = shalt.err (!%p2529_p9)
}
 0x430   : > { %2381 = dma.vmem_to_hbm [thread:$0]  (%p2741_p7), %s1991_s13, 32, %s1993_s12, %s1961_s9  }
 0x431 PF: > { %s3579_s18 = sld [smem:[#allocation9_spill]]  ;;  %p2391_p10 = scmp.ge.s32.totalorder %s2619_s14, 2 }
 0x433   : > { %p2385_p11 = pnand %p2391_p10, %p2749_p12 }
 0x435   : > { %p2386_p13 = pneg %p2385_p11 }
 0x437   : > { %s2004_s0 = sand.u32 1, %s3579_s18  }
 0x438   : > { %s2005_s17 = scalar_lea.sflag [#allocation4], %s2004_s0 }
 0x439   : > { %2574 = dma.done.wait (%p2386_p13), %s2005_s17, 4096  }
 0x43a   : > { %2576 = vsyncadd (%p2386_p13), %s2005_s17, 4294963200  ;;  %s2015_s20 = scalar_lea.sflag [#allocation6], %s2004_s0 }
 0x43b   : > { %2578 = dma.done.wait (%p2386_p13), %s2015_s20, 32  }
 0x43c   : > { %2580 = vsyncadd (%p2386_p13), %s2015_s20, 4294967264  ;;  %s25_s14 = sadd.s32 1, %s2619_s14   ;;  %s3581_s23 = sld [smem:[#allocation16_spill]] }
 0x43d   : > { %p22_p0 = scmp.ge.s32.totalorder %s25_s14, 6   ;;  %s3582_s30 = sld [smem:[#allocation10_spill]] }
 0x43e   : > { %s3583_s9 = sld [smem:[#allocation17_spill]]  ;;  %s3588_s27 = smov %s2587_s28 }
 0x43f   : > { %s3584_s10 = sld [smem:[#allocation11_spill]]  ;;  %s3589_s28 = smov %s2591_s29 }
 0x440   : > { %s3585_s11 = sld [smem:[#allocation12_spill]]  ;;  %24 = sbr.rel (!%p22_p0) target bundleno = 10 (0xa), region = 142 }
 0x441   : > { %s3586_s12 = sld [smem:[#allocation13_spill]] }
 0x442   : > { %s3587_s13 = sld [smem:[#allocation14_spill]]  ;;  %s3590_s29 = smov %s3581_s23 }
 0x445   :  { %2021 = vsyncpa [#allocation4], 1 }
 0x446   :  { %2023 = vsyncpa [#allocation4 + $0x1], 1 }
 0x447   :  { %2024 = vsyncpa [#allocation6], 1 }
 0x448   :  { %2026 = vsyncpa [#allocation6 + $0x1], 1 }

</bundles_post_ra>
